<compile_context>
chip_gen: v5e
topology: v5e:2x2
jax: 0.10.0
libtpu: 0.0.40
codegen_flags: <defaults>
</compile_context>

<pallas_src>
import jax
import jax.numpy as jnp
import numpy as np
from jax.experimental import pallas as pl
from jax.experimental.pallas import tpu as pltpu

NEG_SLOPE = 0.01    # nn.LeakyReLU default negative_slope
BN_EPS = 1e-5       # nn.BatchNorm default eps
ROW_STRIDE = 32     # padded lane stride per image row (must be >= W + 1)
CPAD = 8            # channels padded to one full sublane tile


def _leaky(x):
    return jnp.where(x >= 0, x, NEG_SLOPE * x)


def _full_spec(shape):
    zeros = (0,) * len(shape)
    return pl.BlockSpec(shape, lambda i, _z=zeros: _z)


# ------------------------- fused Pallas kernel -------------------------

def _make_fg_kernel(Ltot, Cp, R, Wp):
    # tap t = kh*3 + kw  <->  (dh, dw) = (kh-1, kw-1); tap value at flattened
    # pixel p is y[p + dh*Wp + dw]  ==  roll(y, -(dh*Wp + dw)) along the lane axis.
    shifts = tuple((-(dh * Wp + dw)) % Ltot
                   for dh in (-1, 0, 1) for dw in (-1, 0, 1))

    def kernel(x_ref, mask_ref, bn0_s_ref, bn0_b_ref, w_ref, shift_ref,
               hw_ref, hb_ref, out_ref, taps_ref):
        mask = mask_ref[...]                                        # (1, Ltot) 0/1

        # ---- foreground_transformer: BatchNorm (eval affine) -> LeakyReLU ----
        # The mask restores zeros at halo rows / row padding (channel padding
        # stays zero by construction of the padded params).
        y = _leaky(x_ref[...] * bn0_s_ref[...] + bn0_b_ref[...]) * mask

        # ---- ConvBlock: repeat x [conv3x3(pad=1) -> BN -> LeakyReLU] ----
        for l in range(R):
            for t, s in enumerate(shifts):                          # im2col via XLU rolls
                tap = y if s == 0 else pltpu.roll(y, shift=s, axis=1)
                taps_ref[pl.ds(t * Cp, Cp), :] = tap
            acc = jnp.dot(w_ref[l], taps_ref[...],                  # (Cp,9Cp)@(9Cp,Ltot) on MXU
                          preferred_element_type=jnp.float32)
            y = _leaky(acc + shift_ref[l])                          # conv bias folded into shift
            if l < R - 1:
                y = y * mask                                        # re-zero halo for next conv

        # ---- coarse + fine classifiers fused into one 1x1-conv MXU matmul ----
        out_ref[...] = (jnp.dot(hw_ref[...], y, preferred_element_type=jnp.float32)
                        + hb_ref[...])

    return kernel


# ------------------------- forward wrapper -------------------------

def foreground_branch_pallas(x_nchw, P):
    N, C, H, W = x_nchw.shape
    Wp, Cp = ROW_STRIDE, CPAD
    assert W + 1 <= Wp and C <= Cp
    Hp = H + 2
    Ltot = N * Hp * Wp
    R = len(P["convblock"])
    Ncls = P["fine_w"].shape[1]
    NH = 1 + Ncls

    # Layout plumbing (tiny): channels-major, rows padded to Wp lanes, one zero
    # halo row above/below each image, batch packed along the lane axis.
    x = jnp.pad(x_nchw.astype(jnp.float32), ((0, 0), (0, Cp - C), (0, 0), (0, 0)))
    x = jnp.transpose(x, (1, 0, 2, 3))                              # (Cp, N, H, W)
    x = jnp.pad(x, ((0, 0), (0, 0), (1, 1), (0, Wp - W)))           # (Cp, N, Hp, Wp)
    x_flat = x.reshape(Cp, Ltot)
    mask = jnp.pad(jnp.ones((1, N, H, W), jnp.float32),
                   ((0, 0), (0, 0), (1, 1), (0, Wp - W))).reshape(1, Ltot)

    # Fold + pack parameters (tiny host-side ops).
    conv_w, conv_shift = [], []
    for (w, b, s, sh) in P["convblock"]:
        wf = w.reshape(9, C, C) * s[None, None, :]                  # BN scale folded in
        wp = jnp.zeros((9, Cp, Cp), jnp.float32).at[:, :C, :C].set(wf)
        conv_w.append(jnp.transpose(wp, (2, 0, 1)).reshape(Cp, 9 * Cp))
        conv_shift.append(jnp.zeros((Cp, 1), jnp.float32).at[:C, 0].set(sh + s * b))
    conv_w = jnp.stack(conv_w)                                      # (R, Cp, 9*Cp)
    conv_shift = jnp.stack(conv_shift)                              # (R, Cp, 1)

    bn0_s = jnp.zeros((Cp, 1), jnp.float32).at[:C, 0].set(P["bn0_scale"])
    bn0_b = jnp.zeros((Cp, 1), jnp.float32).at[:C, 0].set(P["bn0_shift"])

    cwT = P["coarse_w"].reshape(C, 1).T                             # (1, C)
    cb = P["coarse_b"].reshape(1, 1)
    fwT = P["fine_w"].T                                             # (Ncls, 1 + C), col 0 <-> coarse
    fb = P["fine_b"].reshape(Ncls, 1)
    fine_w_eff = fwT[:, 1:] + fwT[:, :1] @ cwT                      # coarse folded into fine
    head_w = jnp.zeros((NH, Cp), jnp.float32).at[:, :C].set(
        jnp.concatenate([cwT, fine_w_eff], axis=0))                 # (NH, Cp)
    head_b = jnp.concatenate([cb, fb + fwT[:, :1] * cb], axis=0)    # (NH, 1)

    params = (mask, bn0_s, bn0_b, conv_w, conv_shift, head_w, head_b)

    kernel = _make_fg_kernel(Ltot, Cp, R, Wp)
    out = pl.pallas_call(
        kernel,
        out_shape=jax.ShapeDtypeStruct((NH, Ltot), jnp.float32),
        grid=(1,),                                                  # whole batch in one step
        in_specs=[_full_spec((Cp, Ltot))] + [_full_spec(p.shape) for p in params],
        out_specs=_full_spec((NH, Ltot)),
        scratch_shapes=[pltpu.VMEM((9 * Cp, Ltot), jnp.float32)],
        compiler_params=pltpu.CompilerParams(dimension_semantics=("arbitrary",)),
    )(x_flat, *params)

    # Unpack the padded lane layout: (NH, N, Hp, Wp) -> valid (N, NH, H, W).
    out = out.reshape(NH, N, Hp, Wp)[:, :, 1:H + 1, :W].transpose(1, 0, 2, 3)
    return out[:, :1], out[:, 1:]                                   # coarse, fine


# ------------------------- pure-JAX reference -------------------------

def foreground_branch_reference(x_nchw, P):
    x = jnp.transpose(x_nchw, (0, 2, 3, 1))
    y = _leaky(x * P["bn0_scale"] + P["bn0_shift"])
    for (w, b, s, sh) in P["convblock"]:
        z = jax.lax.conv_general_dilated(
            y, w, window_strides=(1, 1), padding="SAME",
            dimension_numbers=("NHWC", "HWIO", "NHWC")) + b
        y = _leaky(z * s + sh)
    coarse = jnp.einsum("nhwc,co->nhwo", y, P["coarse_w"]) + P["coarse_b"]
    fine_in = jnp.concatenate([coarse, y], axis=-1)
    fine = jnp.einsum("nhwc,co->nhwo", fine_in, P["fine_w"]) + P["fine_b"]
    return coarse.transpose(0, 3, 1, 2), fine.transpose(0, 3, 1, 2)


# ------------------------- main -------------------------

if __name__ == "__main__":
    N, C, H, W = 2, 4, 16, 16
    REPEAT = 2
    PRIORITY_CAT = 1
    N_CLASSES = 3

    keys = iter(jax.random.split(jax.random.PRNGKey(0), 64))

    def nrm(shape, scale=0.1):
        return (scale * jax.random.normal(next(keys), shape)).astype(jnp.float32)

    def make_bn(c):
        gamma = 1.0 + nrm((c,))
        beta = nrm((c,))
        mean = nrm((c,))
        var = 1.0 + jnp.abs(nrm((c,)))
        scale = gamma / jnp.sqrt(var + BN_EPS)
        shift = beta - mean * scale
        return scale, shift

    bn0_scale, bn0_shift = make_bn(C)
    convblock = []
    for _ in range(REPEAT):
        w = nrm((3, 3, C, C), scale=0.3)   # HWIO
        b = nrm((C,))
        s, sh = make_bn(C)
        convblock.append((w, b, s, sh))

    P = dict(
        bn0_scale=bn0_scale, bn0_shift=bn0_shift, convblock=convblock,
        coarse_w=nrm((C, 1), scale=0.3), coarse_b=nrm((1,)),
        fine_w=nrm((C + PRIORITY_CAT, N_CLASSES), scale=0.3),
        fine_b=nrm((N_CLASSES,)),
    )

    x = jax.random.normal(next(keys), (N, C, H, W), jnp.float32)   # NCHW input

    coarse, fine = foreground_branch_pallas(x, P)
    jax.block_until_ready((coarse, fine))

    coarse_ref, fine_ref = foreground_branch_reference(x, P)
    np.testing.assert_allclose(np.asarray(coarse), np.asarray(coarse_ref),
                               rtol=1e-4, atol=1e-4)
    np.testing.assert_allclose(np.asarray(fine), np.asarray(fine_ref),
                               rtol=1e-4, atol=1e-4)
    assert coarse.shape == (N, 1, H, W) and fine.shape == (N, N_CLASSES, H, W)

    print("KERNEL_OK")
</pallas_src>

<mosaic_0001>
module attributes {stable_mosaic.version = 11 : i64} {
  func.func @kernel(%arg0: i32, %arg1: memref<8x1152xf32, #tpu.memory_space<vmem>>, %arg2: memref<1x1152xf32, #tpu.memory_space<vmem>>, %arg3: memref<8x1xf32, #tpu.memory_space<vmem>>, %arg4: memref<8x1xf32, #tpu.memory_space<vmem>>, %arg5: memref<2x8x72xf32, #tpu.memory_space<vmem>>, %arg6: memref<2x8x1xf32, #tpu.memory_space<vmem>>, %arg7: memref<4x8xf32, #tpu.memory_space<vmem>>, %arg8: memref<4x1xf32, #tpu.memory_space<vmem>>, %arg9: memref<4x1152xf32, #tpu.memory_space<vmem>>, %arg10: memref<72x1152xf32, #tpu.memory_space<vmem>>) attributes {dimension_semantics = [#tpu.dimension_semantics<arbitrary>], iteration_bounds = array<i64: 1>, scalar_prefetch = 0 : i64, scratch_operands = 1 : i64, tpu.core_type = #tpu.core_type<tc>, window_params = [{pipeline_mode = #tpu.pipeline_mode<synchronous>, transform_indices = @transform_0, window_bounds = array<i64: 8, 1152>}, {pipeline_mode = #tpu.pipeline_mode<synchronous>, transform_indices = @transform_1, window_bounds = array<i64: 1, 1152>}, {pipeline_mode = #tpu.pipeline_mode<synchronous>, transform_indices = @transform_2, window_bounds = array<i64: 8, 1>}, {pipeline_mode = #tpu.pipeline_mode<synchronous>, transform_indices = @transform_3, window_bounds = array<i64: 8, 1>}, {pipeline_mode = #tpu.pipeline_mode<synchronous>, transform_indices = @transform_4, window_bounds = array<i64: 2, 8, 72>}, {pipeline_mode = #tpu.pipeline_mode<synchronous>, transform_indices = @transform_5, window_bounds = array<i64: 2, 8, 1>}, {pipeline_mode = #tpu.pipeline_mode<synchronous>, transform_indices = @transform_6, window_bounds = array<i64: 4, 8>}, {pipeline_mode = #tpu.pipeline_mode<synchronous>, transform_indices = @transform_7, window_bounds = array<i64: 4, 1>}, {pipeline_mode = #tpu.pipeline_mode<synchronous>, transform_indices = @transform_8, window_bounds = array<i64: 4, 1152>}]} {
    %c0 = arith.constant 0 : index
    %c0_0 = arith.constant 0 : index
    %0 = vector.load %arg2[%c0, %c0_0] : memref<1x1152xf32, #tpu.memory_space<vmem>>, vector<1x1152xf32>
    %c0_1 = arith.constant 0 : index
    %c0_2 = arith.constant 0 : index
    %1 = vector.load %arg1[%c0_1, %c0_2] : memref<8x1152xf32, #tpu.memory_space<vmem>>, vector<8x1152xf32>
    %c0_3 = arith.constant 0 : index
    %c0_4 = arith.constant 0 : index
    %2 = vector.load %arg3[%c0_3, %c0_4] : memref<8x1xf32, #tpu.memory_space<vmem>>, vector<8x1xf32>
    %3 = vector.broadcast %2 : vector<8x1xf32> to vector<8x1152xf32>
    %4 = arith.mulf %1, %3 : vector<8x1152xf32>
    %c0_5 = arith.constant 0 : index
    %c0_6 = arith.constant 0 : index
    %5 = vector.load %arg4[%c0_5, %c0_6] : memref<8x1xf32, #tpu.memory_space<vmem>>, vector<8x1xf32>
    %6 = vector.broadcast %5 : vector<8x1xf32> to vector<8x1152xf32>
    %7 = arith.addf %4, %6 : vector<8x1152xf32>
    %cst = arith.constant 0.000000e+00 : f32
    %8 = vector.broadcast %cst : f32 to vector<8x1152xf32>
    %9 = arith.cmpf oge, %7, %8 : vector<8x1152xf32>
    %cst_7 = arith.constant 0.00999999977 : f32
    %10 = vector.broadcast %cst_7 : f32 to vector<8x1152xf32>
    %11 = arith.mulf %10, %7 : vector<8x1152xf32>
    %12 = arith.select %9, %7, %11 : vector<8x1152xi1>, vector<8x1152xf32>
    %13 = vector.broadcast %0 : vector<1x1152xf32> to vector<8x1152xf32>
    %14 = arith.mulf %12, %13 : vector<8x1152xf32>
    %c33_i32 = arith.constant 33 : i32
    %15 = tpu.dynamic_rotate %14 by %c33_i32 dim 1 : vector<8x1152xf32>, i32 -> vector<8x1152xf32>
    %c0_8 = arith.constant 0 : index
    %c0_9 = arith.constant 0 : index
    %16 = vector.load %arg10[%c0_8, %c0_9] : memref<72x1152xf32, #tpu.memory_space<vmem>>, vector<8x1152xf32>
    tpu.vector_store %arg10[%c0_8, %c0_9], %15 {strides = array<i32>} : memref<72x1152xf32, #tpu.memory_space<vmem>>, vector<8x1152xf32>,
    %c32_i32 = arith.constant 32 : i32
    %17 = tpu.dynamic_rotate %14 by %c32_i32 dim 1 : vector<8x1152xf32>, i32 -> vector<8x1152xf32>
    %c8 = arith.constant 8 : index
    %c0_10 = arith.constant 0 : index
    %18 = vector.load %arg10[%c8, %c0_10] : memref<72x1152xf32, #tpu.memory_space<vmem>>, vector<8x1152xf32>
    tpu.vector_store %arg10[%c8, %c0_10], %17 {strides = array<i32>} : memref<72x1152xf32, #tpu.memory_space<vmem>>, vector<8x1152xf32>,
    %c31_i32 = arith.constant 31 : i32
    %19 = tpu.dynamic_rotate %14 by %c31_i32 dim 1 : vector<8x1152xf32>, i32 -> vector<8x1152xf32>
    %c16 = arith.constant 16 : index
    %c0_11 = arith.constant 0 : index
    %20 = vector.load %arg10[%c16, %c0_11] : memref<72x1152xf32, #tpu.memory_space<vmem>>, vector<8x1152xf32>
    tpu.vector_store %arg10[%c16, %c0_11], %19 {strides = array<i32>} : memref<72x1152xf32, #tpu.memory_space<vmem>>, vector<8x1152xf32>,
    %c1_i32 = arith.constant 1 : i32
    %21 = tpu.dynamic_rotate %14 by %c1_i32 dim 1 : vector<8x1152xf32>, i32 -> vector<8x1152xf32>
    %c24 = arith.constant 24 : index
    %c0_12 = arith.constant 0 : index
    %22 = vector.load %arg10[%c24, %c0_12] : memref<72x1152xf32, #tpu.memory_space<vmem>>, vector<8x1152xf32>
    tpu.vector_store %arg10[%c24, %c0_12], %21 {strides = array<i32>} : memref<72x1152xf32, #tpu.memory_space<vmem>>, vector<8x1152xf32>,
    %c32 = arith.constant 32 : index
    %c0_13 = arith.constant 0 : index
    %23 = vector.load %arg10[%c32, %c0_13] : memref<72x1152xf32, #tpu.memory_space<vmem>>, vector<8x1152xf32>
    tpu.vector_store %arg10[%c32, %c0_13], %14 {strides = array<i32>} : memref<72x1152xf32, #tpu.memory_space<vmem>>, vector<8x1152xf32>,
    %c1151_i32 = arith.constant 1151 : i32
    %24 = tpu.dynamic_rotate %14 by %c1151_i32 dim 1 : vector<8x1152xf32>, i32 -> vector<8x1152xf32>
    %c40 = arith.constant 40 : index
    %c0_14 = arith.constant 0 : index
    %25 = vector.load %arg10[%c40, %c0_14] : memref<72x1152xf32, #tpu.memory_space<vmem>>, vector<8x1152xf32>
    tpu.vector_store %arg10[%c40, %c0_14], %24 {strides = array<i32>} : memref<72x1152xf32, #tpu.memory_space<vmem>>, vector<8x1152xf32>,
    %c1121_i32 = arith.constant 1121 : i32
    %26 = tpu.dynamic_rotate %14 by %c1121_i32 dim 1 : vector<8x1152xf32>, i32 -> vector<8x1152xf32>
    %c48 = arith.constant 48 : index
    %c0_15 = arith.constant 0 : index
    %27 = vector.load %arg10[%c48, %c0_15] : memref<72x1152xf32, #tpu.memory_space<vmem>>, vector<8x1152xf32>
    tpu.vector_store %arg10[%c48, %c0_15], %26 {strides = array<i32>} : memref<72x1152xf32, #tpu.memory_space<vmem>>, vector<8x1152xf32>,
    %c1120_i32 = arith.constant 1120 : i32
    %28 = tpu.dynamic_rotate %14 by %c1120_i32 dim 1 : vector<8x1152xf32>, i32 -> vector<8x1152xf32>
    %c56 = arith.constant 56 : index
    %c0_16 = arith.constant 0 : index
    %29 = vector.load %arg10[%c56, %c0_16] : memref<72x1152xf32, #tpu.memory_space<vmem>>, vector<8x1152xf32>
    tpu.vector_store %arg10[%c56, %c0_16], %28 {strides = array<i32>} : memref<72x1152xf32, #tpu.memory_space<vmem>>, vector<8x1152xf32>,
    %c1119_i32 = arith.constant 1119 : i32
    %30 = tpu.dynamic_rotate %14 by %c1119_i32 dim 1 : vector<8x1152xf32>, i32 -> vector<8x1152xf32>
    %c64 = arith.constant 64 : index
    %c0_17 = arith.constant 0 : index
    %31 = vector.load %arg10[%c64, %c0_17] : memref<72x1152xf32, #tpu.memory_space<vmem>>, vector<8x1152xf32>
    tpu.vector_store %arg10[%c64, %c0_17], %30 {strides = array<i32>} : memref<72x1152xf32, #tpu.memory_space<vmem>>, vector<8x1152xf32>,
    %c0_18 = arith.constant 0 : index
    %c0_19 = arith.constant 0 : index
    %c0_20 = arith.constant 0 : index
    %32 = vector.load %arg5[%c0_18, %c0_19, %c0_20] : memref<2x8x72xf32, #tpu.memory_space<vmem>>, vector<1x8x72xf32>
    %33 = vector.shape_cast %32 : vector<1x8x72xf32> to vector<8x72xf32>
    %c0_21 = arith.constant 0 : index
    %c0_22 = arith.constant 0 : index
    %34 = vector.load %arg10[%c0_21, %c0_22] : memref<72x1152xf32, #tpu.memory_space<vmem>>, vector<72x1152xf32>
    %cst_23 = arith.constant dense<0.000000e+00> : vector<8x1152xf32>
    %35 = tpu.matmul %33, %34, %cst_23 {dimension_numbers = #tpu.dot_dimension_numbers<[1], [0], [0], [1], [0, 0, 1, 1], [], []>} : vector<8x72xf32>, vector<72x1152xf32>, vector<8x1152xf32> -> vector<8x1152xf32>
    %c0_24 = arith.constant 0 : index
    %c0_25 = arith.constant 0 : index
    %c0_26 = arith.constant 0 : index
    %36 = vector.load %arg6[%c0_24, %c0_25, %c0_26] : memref<2x8x1xf32, #tpu.memory_space<vmem>>, vector<1x8x1xf32>
    %37 = vector.shape_cast %36 : vector<1x8x1xf32> to vector<8x1xf32>
    %38 = vector.broadcast %37 : vector<8x1xf32> to vector<8x1152xf32>
    %39 = arith.addf %35, %38 : vector<8x1152xf32>
    %cst_27 = arith.constant 0.000000e+00 : f32
    %40 = vector.broadcast %cst_27 : f32 to vector<8x1152xf32>
    %41 = arith.cmpf oge, %39, %40 : vector<8x1152xf32>
    %cst_28 = arith.constant 0.00999999977 : f32
    %42 = vector.broadcast %cst_28 : f32 to vector<8x1152xf32>
    %43 = arith.mulf %42, %39 : vector<8x1152xf32>
    %44 = arith.select %41, %39, %43 : vector<8x1152xi1>, vector<8x1152xf32>
    %45 = vector.broadcast %0 : vector<1x1152xf32> to vector<8x1152xf32>
    %46 = arith.mulf %44, %45 : vector<8x1152xf32>
    %c33_i32_29 = arith.constant 33 : i32
    %47 = tpu.dynamic_rotate %46 by %c33_i32_29 dim 1 : vector<8x1152xf32>, i32 -> vector<8x1152xf32>
    %c0_30 = arith.constant 0 : index
    %c0_31 = arith.constant 0 : index
    %48 = vector.load %arg10[%c0_30, %c0_31] : memref<72x1152xf32, #tpu.memory_space<vmem>>, vector<8x1152xf32>
    tpu.vector_store %arg10[%c0_30, %c0_31], %47 {strides = array<i32>} : memref<72x1152xf32, #tpu.memory_space<vmem>>, vector<8x1152xf32>,
    %c32_i32_32 = arith.constant 32 : i32
    %49 = tpu.dynamic_rotate %46 by %c32_i32_32 dim 1 : vector<8x1152xf32>, i32 -> vector<8x1152xf32>
    %c8_33 = arith.constant 8 : index
    %c0_34 = arith.constant 0 : index
    %50 = vector.load %arg10[%c8_33, %c0_34] : memref<72x1152xf32, #tpu.memory_space<vmem>>, vector<8x1152xf32>
    tpu.vector_store %arg10[%c8_33, %c0_34], %49 {strides = array<i32>} : memref<72x1152xf32, #tpu.memory_space<vmem>>, vector<8x1152xf32>,
    %c31_i32_35 = arith.constant 31 : i32
    %51 = tpu.dynamic_rotate %46 by %c31_i32_35 dim 1 : vector<8x1152xf32>, i32 -> vector<8x1152xf32>
    %c16_36 = arith.constant 16 : index
    %c0_37 = arith.constant 0 : index
    %52 = vector.load %arg10[%c16_36, %c0_37] : memref<72x1152xf32, #tpu.memory_space<vmem>>, vector<8x1152xf32>
    tpu.vector_store %arg10[%c16_36, %c0_37], %51 {strides = array<i32>} : memref<72x1152xf32, #tpu.memory_space<vmem>>, vector<8x1152xf32>,
    %c1_i32_38 = arith.constant 1 : i32
    %53 = tpu.dynamic_rotate %46 by %c1_i32_38 dim 1 : vector<8x1152xf32>, i32 -> vector<8x1152xf32>
    %c24_39 = arith.constant 24 : index
    %c0_40 = arith.constant 0 : index
    %54 = vector.load %arg10[%c24_39, %c0_40] : memref<72x1152xf32, #tpu.memory_space<vmem>>, vector<8x1152xf32>
    tpu.vector_store %arg10[%c24_39, %c0_40], %53 {strides = array<i32>} : memref<72x1152xf32, #tpu.memory_space<vmem>>, vector<8x1152xf32>,
    %c32_41 = arith.constant 32 : index
    %c0_42 = arith.constant 0 : index
    %55 = vector.load %arg10[%c32_41, %c0_42] : memref<72x1152xf32, #tpu.memory_space<vmem>>, vector<8x1152xf32>
    tpu.vector_store %arg10[%c32_41, %c0_42], %46 {strides = array<i32>} : memref<72x1152xf32, #tpu.memory_space<vmem>>, vector<8x1152xf32>,
    %c1151_i32_43 = arith.constant 1151 : i32
    %56 = tpu.dynamic_rotate %46 by %c1151_i32_43 dim 1 : vector<8x1152xf32>, i32 -> vector<8x1152xf32>
    %c40_44 = arith.constant 40 : index
    %c0_45 = arith.constant 0 : index
    %57 = vector.load %arg10[%c40_44, %c0_45] : memref<72x1152xf32, #tpu.memory_space<vmem>>, vector<8x1152xf32>
    tpu.vector_store %arg10[%c40_44, %c0_45], %56 {strides = array<i32>} : memref<72x1152xf32, #tpu.memory_space<vmem>>, vector<8x1152xf32>,
    %c1121_i32_46 = arith.constant 1121 : i32
    %58 = tpu.dynamic_rotate %46 by %c1121_i32_46 dim 1 : vector<8x1152xf32>, i32 -> vector<8x1152xf32>
    %c48_47 = arith.constant 48 : index
    %c0_48 = arith.constant 0 : index
    %59 = vector.load %arg10[%c48_47, %c0_48] : memref<72x1152xf32, #tpu.memory_space<vmem>>, vector<8x1152xf32>
    tpu.vector_store %arg10[%c48_47, %c0_48], %58 {strides = array<i32>} : memref<72x1152xf32, #tpu.memory_space<vmem>>, vector<8x1152xf32>,
    %c1120_i32_49 = arith.constant 1120 : i32
    %60 = tpu.dynamic_rotate %46 by %c1120_i32_49 dim 1 : vector<8x1152xf32>, i32 -> vector<8x1152xf32>
    %c56_50 = arith.constant 56 : index
    %c0_51 = arith.constant 0 : index
    %61 = vector.load %arg10[%c56_50, %c0_51] : memref<72x1152xf32, #tpu.memory_space<vmem>>, vector<8x1152xf32>
    tpu.vector_store %arg10[%c56_50, %c0_51], %60 {strides = array<i32>} : memref<72x1152xf32, #tpu.memory_space<vmem>>, vector<8x1152xf32>,
    %c1119_i32_52 = arith.constant 1119 : i32
    %62 = tpu.dynamic_rotate %46 by %c1119_i32_52 dim 1 : vector<8x1152xf32>, i32 -> vector<8x1152xf32>
    %c64_53 = arith.constant 64 : index
    %c0_54 = arith.constant 0 : index
    %63 = vector.load %arg10[%c64_53, %c0_54] : memref<72x1152xf32, #tpu.memory_space<vmem>>, vector<8x1152xf32>
    tpu.vector_store %arg10[%c64_53, %c0_54], %62 {strides = array<i32>} : memref<72x1152xf32, #tpu.memory_space<vmem>>, vector<8x1152xf32>,
    %c1 = arith.constant 1 : index
    %c0_55 = arith.constant 0 : index
    %c0_56 = arith.constant 0 : index
    %64 = vector.load %arg5[%c1, %c0_55, %c0_56] : memref<2x8x72xf32, #tpu.memory_space<vmem>>, vector<1x8x72xf32>
    %65 = vector.shape_cast %64 : vector<1x8x72xf32> to vector<8x72xf32>
    %c0_57 = arith.constant 0 : index
    %c0_58 = arith.constant 0 : index
    %66 = vector.load %arg10[%c0_57, %c0_58] : memref<72x1152xf32, #tpu.memory_space<vmem>>, vector<72x1152xf32>
    %cst_59 = arith.constant dense<0.000000e+00> : vector<8x1152xf32>
    %67 = tpu.matmul %65, %66, %cst_59 {dimension_numbers = #tpu.dot_dimension_numbers<[1], [0], [0], [1], [0, 0, 1, 1], [], []>} : vector<8x72xf32>, vector<72x1152xf32>, vector<8x1152xf32> -> vector<8x1152xf32>
    %c1_60 = arith.constant 1 : index
    %c0_61 = arith.constant 0 : index
    %c0_62 = arith.constant 0 : index
    %68 = vector.load %arg6[%c1_60, %c0_61, %c0_62] : memref<2x8x1xf32, #tpu.memory_space<vmem>>, vector<1x8x1xf32>
    %69 = vector.shape_cast %68 : vector<1x8x1xf32> to vector<8x1xf32>
    %70 = vector.broadcast %69 : vector<8x1xf32> to vector<8x1152xf32>
    %71 = arith.addf %67, %70 : vector<8x1152xf32>
    %cst_63 = arith.constant 0.000000e+00 : f32
    %72 = vector.broadcast %cst_63 : f32 to vector<8x1152xf32>
    %73 = arith.cmpf oge, %71, %72 : vector<8x1152xf32>
    %cst_64 = arith.constant 0.00999999977 : f32
    %74 = vector.broadcast %cst_64 : f32 to vector<8x1152xf32>
    %75 = arith.mulf %74, %71 : vector<8x1152xf32>
    %76 = arith.select %73, %71, %75 : vector<8x1152xi1>, vector<8x1152xf32>
    %c0_65 = arith.constant 0 : index
    %c0_66 = arith.constant 0 : index
    %77 = vector.load %arg7[%c0_65, %c0_66] : memref<4x8xf32, #tpu.memory_space<vmem>>, vector<4x8xf32>
    %cst_67 = arith.constant dense<0.000000e+00> : vector<4x1152xf32>
    %78 = tpu.matmul %77, %76, %cst_67 {dimension_numbers = #tpu.dot_dimension_numbers<[1], [0], [0], [1], [0, 0, 1, 1], [], []>} : vector<4x8xf32>, vector<8x1152xf32>, vector<4x1152xf32> -> vector<4x1152xf32>
    %c0_68 = arith.constant 0 : index
    %c0_69 = arith.constant 0 : index
    %79 = vector.load %arg8[%c0_68, %c0_69] : memref<4x1xf32, #tpu.memory_space<vmem>>, vector<4x1xf32>
    %80 = vector.broadcast %79 : vector<4x1xf32> to vector<4x1152xf32>
    %81 = arith.addf %78, %80 : vector<4x1152xf32>
    %c0_70 = arith.constant 0 : index
    %c0_71 = arith.constant 0 : index
    %82 = vector.load %arg9[%c0_70, %c0_71] : memref<4x1152xf32, #tpu.memory_space<vmem>>, vector<4x1152xf32>
    tpu.vector_store %arg9[%c0_70, %c0_71], %81 {strides = array<i32>} : memref<4x1152xf32, #tpu.memory_space<vmem>>, vector<4x1152xf32>,
    return
  }
  func.func @transform_0(%arg0: i32) -> (i32, i32) {
    %c0_i32 = arith.constant 0 : i32
    %c0_i32_0 = arith.constant 0 : i32
    %c0_i32_1 = arith.constant 0 : i32
    return %c0_i32, %c0_i32_0 : i32, i32
  }
  func.func @transform_1(%arg0: i32) -> (i32, i32) {
    %c0_i32 = arith.constant 0 : i32
    %c0_i32_0 = arith.constant 0 : i32
    %c0_i32_1 = arith.constant 0 : i32
    return %c0_i32, %c0_i32_0 : i32, i32
  }
  func.func @transform_2(%arg0: i32) -> (i32, i32) {
    %c0_i32 = arith.constant 0 : i32
    %c0_i32_0 = arith.constant 0 : i32
    %c0_i32_1 = arith.constant 0 : i32
    return %c0_i32, %c0_i32_0 : i32, i32
  }
  func.func @transform_3(%arg0: i32) -> (i32, i32) {
    %c0_i32 = arith.constant 0 : i32
    %c0_i32_0 = arith.constant 0 : i32
    %c0_i32_1 = arith.constant 0 : i32
    return %c0_i32, %c0_i32_0 : i32, i32
  }
  func.func @transform_4(%arg0: i32) -> (i32, i32, i32) {
    %c0_i32 = arith.constant 0 : i32
    %c0_i32_0 = arith.constant 0 : i32
    %c0_i32_1 = arith.constant 0 : i32
    %c0_i32_2 = arith.constant 0 : i32
    return %c0_i32, %c0_i32_0, %c0_i32_1 : i32, i32, i32
  }
  func.func @transform_5(%arg0: i32) -> (i32, i32, i32) {
    %c0_i32 = arith.constant 0 : i32
    %c0_i32_0 = arith.constant 0 : i32
    %c0_i32_1 = arith.constant 0 : i32
    %c0_i32_2 = arith.constant 0 : i32
    return %c0_i32, %c0_i32_0, %c0_i32_1 : i32, i32, i32
  }
  func.func @transform_6(%arg0: i32) -> (i32, i32) {
    %c0_i32 = arith.constant 0 : i32
    %c0_i32_0 = arith.constant 0 : i32
    %c0_i32_1 = arith.constant 0 : i32
    return %c0_i32, %c0_i32_0 : i32, i32
  }
  func.func @transform_7(%arg0: i32) -> (i32, i32) {
    %c0_i32 = arith.constant 0 : i32
    %c0_i32_0 = arith.constant 0 : i32
    %c0_i32_1 = arith.constant 0 : i32
    return %c0_i32, %c0_i32_0 : i32, i32
  }
  func.func @transform_8(%arg0: i32) -> (i32, i32) {
    %c0_i32 = arith.constant 0 : i32
    %c0_i32_0 = arith.constant 0 : i32
    %c0_i32_1 = arith.constant 0 : i32
    return %c0_i32, %c0_i32_0 : i32, i32
  }
}

</mosaic_0001>

<bundles_post_ra>
// kernel: tpu_custom_call.1
= control target key start
LH: loop header
LB: loop body
LE: loop exit
PB: predicated region body
PF: predicated region fallthrough
CT: control target
= control target key end

     0   :  { %13 = vsyncpa [#allocation4], 0  ;;  %s3150_s0 = inlined_call_operand.hbm [shape: f32[8,1152], index: 0, kind: input, shape index: {}]   ;;  %s3151_s1 = inlined_call_operand.vmem [shape: f32[1,1152], index: 1, kind: input, shape index: {}]   ;;  %s3152_s2 = inlined_call_operand.vmem [shape: f32[8,1], index: 2, kind: input, shape index: {}]   ;;  %s3153_s3 = inlined_call_operand.vmem [shape: f32[8,1], index: 3, kind: input, shape index: {}]   ;;  %s3154_s4 = inlined_call_operand.vmem [shape: f32[2,8,72], index: 4, kind: input, shape index: {}]   ;;  %s3155_s5 = inlined_call_operand.vmem [shape: f32[2,8,1], index: 5, kind: input, shape index: {}]   ;;  %s3156_s6 = inlined_call_operand.vmem [shape: f32[4,8], index: 6, kind: input, shape index: {}]   ;;  %s3157_s7 = inlined_call_operand.vmem [shape: f32[4,1], index: 7, kind: input, shape index: {}]   ;;  %s3158_s8 = inlined_call_operand.hbm [shape: f32[4,1152], index: 8, kind: output, shape index: {}]  }
   0x1   :  { %14 = vsyncpa [#allocation5], 0  ;;  %s20_s29 = sshll.u32 %s3150_s0, 4  ;;  %s2002_s30 = smov [#allocation3]   ;;  %s21_s29 = int_to_ptr.hbm [resolvable:$true] %s20_s29 }
   0x2   :  { %s22_s9 = sshll.u32 %s2002_s30, 4  ;;  %s23_s9 = int_to_ptr.vmem [resolvable:$true] %s22_s9 }
   0x3   :  { %25 = dma.hbm_to_vmem [thread:$0]  %s21_s29, 1152, %s23_s9, [#allocation4]  }
   0x4   :  { %1998 = dma.done.wait [#allocation4], 1152  }
   0x5   :  { %1999 = vsyncadd [#allocation4], 4294966144  ;;  %v2003_v0 = vmov 0   ;;  %v55_v1 = vld [vmem:[%s3152_s2] sm:$0xff]  ;;  %v47_v5 = vld [vmem:[#allocation3 + $0x8] sm:$0xff]  ;;  %s2005_s14 = smov 96  }
   0x6   :  { %1627 = vset.pattern.permute.xlu0 %v2003_v0  ;;  %1948 = vset.pattern.permute.xlu2 %v2003_v0  ;;  %v70_v2 = vld [vmem:[%s3153_s3] sm:$0xff]  ;;  %v48_v6 = vld [vmem:[#allocation3 + $0x10] sm:$0xff]  ;;  %v49_v9 = vld [vmem:[#allocation3 + $0x18] sm:$0xff]  ;;  %s2004_s3 = smov 97   ;;  %s2006_s15 = smov 95  }
   0x7   :  { %58 = vperm.xlu0 %1627, %v55_v1   ;;  %v46_v4 = vld [vmem:[#allocation3] sm:$0xff]  ;;  %v51_v24 = vld [vmem:[#allocation3 + $0x28] sm:$0xff]  ;;  %s2007_s16 = smov 127   ;;  %s2008_s19 = smov 1   ;;  %v52_v58 = vld [vmem:[#allocation3 + $0x30] sm:$0xff] }
   0x8   :  { %v2080_v15 = vld [vmem:[%s3151_s1] sm:$0xff]  ;;  %v2138_v55 = vld [vmem:[%s3151_s1 + $0x8] ss:$0 sm:$0xff]  ;;  %v53_v59 = vld [vmem:[#allocation3 + $0x38] sm:$0xff]  ;;  %s2009_s1 = smov 32   ;;  %s2010_s20 = smov 33  }
   0x9   :  { %v50_v20 = vld [vmem:[#allocation3 + $0x20] sm:$0xff]  ;;  %v114_v21 = vperm.slane %v2080_v15, 0  ;;  %v115_v22 = vperm.slane %v2080_v15, 1  ;;  %v116_v32 = vperm.slane %v2080_v15, 2  ;;  %v117_v34 = vperm.slane %v2080_v15, 3  ;;  %s2011_s21 = smov 31  }
   0xa   :  { %v118_v43 = vperm.slane %v2080_v15, 4  ;;  %v119_v44 = vperm.slane %v2080_v15, 5  ;;  %v54_v48 = vld [vmem:[#allocation3 + $0x40] sm:$0xff]  ;;  %s1577_s12 = sshll.u32 %s3158_s8, 4  ;;  %s1578_s12 = int_to_ptr.hbm [resolvable:$true] %s1577_s12 }
   0xf   :  { %73 = vperm.xlu0 %1627, %v70_v2  }
  0x79   :  { %v2067_v3 = vpop.permute.xlu0 %58 }
  0x7a   :  { %v61_v7 = vmul.f32 %v2067_v3, %v46_v4  ;;  %v62_v8 = vmul.f32 %v2067_v3, %v47_v5  ;;  %v63_v13 = vmul.f32 %v2067_v3, %v48_v6  ;;  %v64_v14 = vmul.f32 %v2067_v3, %v49_v9 }
  0x7b   :  { %v65_v26 = vmul.f32 %v2067_v3, %v50_v20  ;;  %v66_v31 = vmul.f32 %v2067_v3, %v51_v24  ;;  %v69_v51 = vmul.f32 %v2067_v3, %v54_v48  ;;  %v67_v61 = vmul.f32 %v2067_v3, %v52_v58 }
  0x7c   :  { %v68_v62 = vmul.f32 %v2067_v3, %v53_v59  ;;  %v120_v3 = vperm.slane %v2080_v15, 6  ;;  %v121_v5 = vperm.slane %v2080_v15, 7 }
  0x81   :  { %v2071_v10 = vpop.permute.xlu0 %73 }
  0x82   :  { %v76_v11 = vadd.f32 %v2071_v10, %v61_v7  ;;  %v77_v12 = vadd.f32 %v2071_v10, %v62_v8  ;;  %v78_v16 = vadd.f32 %v2071_v10, %v63_v13  ;;  %v79_v17 = vadd.f32 %v2071_v10, %v64_v14  ;;  %v530_v14 = vld [vmem:[%s3155_s5] sm:$0xff] }
  0x83   :  { %v80_v33 = vadd.f32 %v2071_v10, %v65_v26  ;;  %v81_v36 = vadd.f32 %v2071_v10, %v66_v31  ;;  %v84_v53 = vadd.f32 %v2071_v10, %v69_v51  ;;  %v82_v0 = vadd.f32 %v2071_v10, %v67_v61 }
  0x84   :  { %vm85_vm0 = vcmp.ge.f32.partialorder %v76_v11, 0.0  ;;  %vm86_vm1 = vcmp.ge.f32.partialorder %v77_v12, 0.0  ;;  %v94_v18 = vmul.f32 0.01, %v76_v11  ;;  %v95_v19 = vmul.f32 0.01, %v77_v12 }
  0x85   :  { %v96_v27 = vmul.f32 0.01, %v78_v16  ;;  %v97_v28 = vmul.f32 0.01, %v79_v17  ;;  %vm87_vm2 = vcmp.ge.f32.partialorder %v78_v16, 0.0  ;;  %vm88_vm3 = vcmp.ge.f32.partialorder %v79_v17, 0.0 }
  0x86   :  { %v103_v23 = vsel %vm85_vm0, %v76_v11, %v94_v18  ;;  %v104_v25 = vsel %vm86_vm1, %v77_v12, %v95_v19  ;;  %v98_v41 = vmul.f32 0.01, %v80_v33  ;;  %v99_v42 = vmul.f32 0.01, %v81_v36 }
  0x87   :  { %v2089_v29 = vmul.f32 %v114_v21, %v103_v23  ;;  %v2093_v30 = vmul.f32 %v115_v22, %v104_v25  ;;  %v105_v37 = vsel %vm87_vm2, %v78_v16, %v96_v27  ;;  %v106_v38 = vsel %vm88_vm3, %v79_v17, %v97_v28 }
  0x88   :  { %v2107_v39 = vmul.f32 %v116_v32, %v105_v37  ;;  %v2111_v40 = vmul.f32 %v117_v34, %v106_v38  ;;  %vm89_vm4 = vcmp.ge.f32.partialorder %v80_v33, 0.0  ;;  %vm90_vm5 = vcmp.ge.f32.partialorder %v81_v36, 0.0 }
  0x89   :  { %v1648_v35 = vpack.i.bf16 %v2093_v30, %v2089_v29  ;;  %v107_v46 = vsel %vm89_vm4, %v80_v33, %v98_v41  ;;  %v108_v47 = vsel %vm90_vm5, %v81_v36, %v99_v42  ;;  %v102_v54 = vmul.f32 0.01, %v84_v53 }
  0x8a   :  { %v1643_v45 = vpack.i.bf16 %v2111_v40, %v2107_v39  ;;  %v2122_v49 = vmul.f32 %v118_v43, %v107_v46  ;;  %v2126_v50 = vmul.f32 %v119_v44, %v108_v47  ;;  %vm93_vm6 = vcmp.ge.f32.partialorder %v84_v53, 0.0 }
  0x8b   :  { %1649 = vrot.lane.b32.xlu0 %v1648_v35, %s2004_s3  ;;  %1639 = vrot.lane.b32.xlu2 %v1648_v35, %s2005_s14  ;;  %v1693_v56 = vpack.i.bf16 %v2107_v39, %v2093_v30  ;;  %v111_v57 = vsel %vm93_vm6, %v84_v53, %v102_v54  ;;  %v83_v1 = vadd.f32 %v2071_v10, %v68_v62  ;;  %v100_v2 = vmul.f32 0.01, %v82_v0 }
  0x8c   :  { %1629 = vrot.lane.b32.xlu1 %v1648_v35, %s2006_s15  ;;  %v1678_v52 = vpack.i.bf16 %v2126_v50, %v2122_v49  ;;  %v2146_v60 = vmul.f32 %v2138_v55, %v111_v57  ;;  %vm91_vm7 = vcmp.ge.f32.partialorder %v82_v0, 0.0  ;;  %v1713_v11 = vpack.i.bf16 %v2122_v49, %v2111_v40 }
  0x8d   :  { %v101_v4 = vmul.f32 0.01, %v83_v1  ;;  %vm92_vm8 = vcmp.ge.f32.partialorder %v83_v1, 0.0  ;;  %v109_v6 = vsel %vm91_vm7, %v82_v0, %v100_v2  ;;  %v159_v18 = vlaneseq }
  0x8e   :  { %v1708_v63 = vpack.i.bf16 %v2146_v60, %v2089_v29  ;;  %v2164_v8 = vmul.f32 %v120_v3, %v109_v6  ;;  %vm536_vm1 = vcmask 588800  }
  0x8f   :  { %v110_v7 = vsel %vm92_vm8, %v83_v1, %v101_v4  ;;  %v2215_v19 = vand.u32 127, %v159_v18 }
  0x90   :  { %v2168_v9 = vmul.f32 %v121_v5, %v110_v7  ;;  %v1773_v12 = vpack.i.bf16 %v2164_v8, %v2126_v50 }
  0x91   :  { %vm429_vm9 = vcmp.lt.s32.totalorder %v2215_v19, 95  ;;  %vm392_vm10 = vcmp.lt.s32.totalorder %v2215_v19, 96  ;;  %vm355_vm11 = vcmp.lt.s32.totalorder %v2215_v19, 97  ;;  %vm318_vm12 = vcmp.lt.s32.totalorder %v2215_v19, 127 }
  0x92   :  { %v1738_v10 = vpack.i.bf16 %v2168_v9, %v2164_v8  ;;  %vm272_vm13 = vcmp.lt.s32.totalorder %v2215_v19, 1  ;;  %vm235_vm14 = vcmp.lt.s32.totalorder %v2215_v19, 31  ;;  %vm198_vm15 = vcmp.lt.s32.totalorder %v2215_v19, 32 }
  0x93   :  { %1664 = vrot.lane.b32.xlu0 %v1648_v35, %s2007_s16  ;;  %1644 = vrot.lane.b32.xlu2 %v1643_v45, %s2005_s14  ;;  %vm161_vm0 = vcmp.lt.s32.totalorder %v2215_v19, 33 }
  0x94   :  { %1634 = vrot.lane.b32.xlu1 %v1643_v45, %s2006_s15 }
  0x9b   :  { %1679 = vrot.lane.b32.xlu0 %v1678_v52, %s2004_s3  ;;  %1659 = vrot.lane.b32.xlu2 %v1643_v45, %s2004_s3 }
  0x9c   :  { %1654 = vrot.lane.b32.xlu1 %v1678_v52, %s2006_s15 }
  0xa3   :  { %1694 = vrot.lane.b32.xlu0 %v1693_v56, %s2008_s19  ;;  %1674 = vrot.lane.b32.xlu2 %v1643_v45, %s2007_s16 }
  0xa4   :  { %1669 = vrot.lane.b32.xlu1 %v1678_v52, %s2005_s14 }
  0xab   :  { %1709 = vrot.lane.b32.xlu0 %v1708_v63, %s2009_s1  ;;  %1689 = vrot.lane.b32.xlu2 %v1678_v52, %s2007_s16 }
  0xac   :  { %1684 = vrot.lane.b32.xlu1 %v1708_v63, %s2008_s19 }
  0xb3   :  { %1724 = vrot.lane.b32.xlu0 %v1708_v63, %s2010_s20  ;;  %1704 = vrot.lane.b32.xlu2 %v1693_v56, %s2011_s21 }
  0xb4   :  { %1699 = vrot.lane.b32.xlu1 %v1708_v63, %s2011_s21 }
  0xbb   :  { %1739 = vrot.lane.b32.xlu0 %v1738_v10, %s2006_s15  ;;  %1719 = vrot.lane.b32.xlu2 %v1693_v56, %s2009_s1 }
  0xbc   :  { %1714 = vrot.lane.b32.xlu1 %v1713_v11, %s2008_s19 }
  0xc3   :  { %1749 = vrot.lane.b32.xlu0 %v1738_v10, %s2005_s14  ;;  %1734 = vrot.lane.b32.xlu2 %v1693_v56, %s2010_s20 }
  0xc4   :  { %1729 = vrot.lane.b32.xlu1 %v1713_v11, %s2011_s21 }
  0xcb   :  { %1759 = vrot.lane.b32.xlu0 %v1738_v10, %s2004_s3  ;;  %427 = vrot.lane.b32.xlu2 %v2146_v60, %s2006_s15 }
  0xcc   :  { %1744 = vrot.lane.b32.xlu1 %v1713_v11, %s2009_s1 }
  0xd3   :  { %316 = vrot.lane.b32.xlu0 %v2146_v60, %s2007_s16  ;;  %390 = vrot.lane.b32.xlu2 %v2146_v60, %s2005_s14 }
  0xd4   :  { %1754 = vrot.lane.b32.xlu1 %v1713_v11, %s2010_s20 }
  0xdb   :  { %1774 = vrot.lane.b32.xlu0 %v1773_v12, %s2011_s21  ;;  %1764 = vrot.lane.b32.xlu2 %v1738_v10, %s2007_s16 }
  0xdc   :  { %353 = vrot.lane.b32.xlu1 %v2146_v60, %s2004_s3 }
  0xe3   :  { %194 = vrot.lane.b32.xlu0 %v2168_v9, %s2009_s1  ;;  %268 = vrot.lane.b32.xlu2 %v2168_v9, %s2008_s19 }
  0xe4   :  { %1769 = vrot.lane.b32.xlu1 %v1773_v12, %s2008_s19 }
  0xe5   :  { %v2200_v13 = vpop.permute.xlu2 %1639 }
  0xe6   :  { %v1642_v25 = vunpack.i.h.bf16 %v2200_v13  ;;  %v1641_v26 = vunpack.i.l.bf16 %v2200_v13 }
  0xe8   :  { %v400_v36 = vsel %vm392_vm10, %v1641_v26, %v1642_v25 }
  0xeb   :  { %533 = vperm.xlu0 %1627, %v530_v14   ;;  %1779 = vrot.lane.b32.xlu2 %v1773_v12, %s2009_s1 }
  0xec   :  { %231 = vrot.lane.b32.xlu1 %v2168_v9, %s2011_s21 }
  0xed   :  { %v2208_v16 = vpop.permute.xlu2 %1644 }
  0xee   :  { %v1647_v47 = vunpack.i.h.bf16 %v2208_v16  ;;  %v1646_v48 = vunpack.i.l.bf16 %v2208_v16 }
  0xf0   :  { %v399_v62 = vsel %vm392_vm10, %v1642_v25, %v1646_v48  ;;  %v398_v63 = vsel %vm392_vm10, %v1646_v48, %v1647_v47 }
  0xf3   :  { %155 = vrot.lane.b32.xlu2 %v2168_v9, %s2010_s20 }
  0xf4   :  { %1784 = vrot.lane.b32.xlu1 %v1773_v12, %s2010_s20 }
  0xf5   :  { %v2213_v17 = vpop.permute.xlu2 %1659 }
  0xf6   :  { %v1662_v54 = vunpack.i.h.bf16 %v2213_v17  ;;  %v1661_v56 = vunpack.i.l.bf16 %v2213_v17 }
  0xf8   :  { %v361_v4 = vsel %vm355_vm11, %v1661_v56, %v1662_v54 }
  0xfd   :  { %v2217_v20 = vpop.permute.xlu0 %1649  ;;  %v2219_v23 = vpop.permute.xlu2 %1674 }
  0xfe   :  { %v2221_v24 = vpop.permute.xlu1 %1629  ;;  %v1652_v31 = vunpack.i.h.bf16 %v2217_v20  ;;  %v1651_v33 = vunpack.i.l.bf16 %v2217_v20  ;;  %v1677_v59 = vunpack.i.h.bf16 %v2219_v23  ;;  %v1676_v61 = vunpack.i.l.bf16 %v2219_v23 }
  0xff   :  { %v1632_v27 = vunpack.i.h.bf16 %v2221_v24  ;;  %v1631_v28 = vunpack.i.l.bf16 %v2221_v24 }
 0x100   :  { %v363_v41 = vsel %vm355_vm11, %v1651_v33, %v1652_v31  ;;  %v362_v2 = vsel %vm355_vm11, %v1652_v31, %v1661_v56  ;;  %v324_v10 = vsel %vm318_vm12, %v1676_v61, %v1677_v59 }
 0x101   :  { %v437_v35 = vsel %vm429_vm9, %v1631_v28, %v1632_v27 }
 0x102   :  { %547 = vmatpush.msra.mxu0 %v437_v35 }
 0x104   :  { %548 = vmatpush.msra.mxu0 %v400_v36 }
 0x105   :  { %v2240_v37 = vpop.permute.xlu0 %1664  ;;  %v2242_v38 = vpop.permute.xlu2 %1689 }
 0x106   :  { %v1667_v42 = vunpack.i.h.bf16 %v2240_v37  ;;  %v1666_v45 = vunpack.i.l.bf16 %v2240_v37  ;;  %v1635_v46 = vpop.permute.xlu1 %1634  ;;  %549 = vmatpush.msra.mxu0 %v363_v41  ;;  %v1691_v36 = vunpack.i.l.bf16 %v2242_v38 }
 0x107   :  { %v1637_v51 = vunpack.i.h.bf16 %v1635_v46  ;;  %v1636_v52 = vunpack.i.l.bf16 %v1635_v46 }
 0x108   :  { %v326_v53 = vsel %vm318_vm12, %v1666_v45, %v1667_v42  ;;  %v325_v7 = vsel %vm318_vm12, %v1667_v42, %v1676_v61  ;;  %v2352_v61 = vld [vmem:[%s3154_s4] sm:$0xff] }
 0x109   :  { %550 = vmatpush.msra.mxu0 %v326_v53  ;;  %v436_v57 = vsel %vm429_vm9, %v1632_v27, %v1636_v52  ;;  %v435_v58 = vsel %vm429_vm9, %v1636_v52, %v1637_v51  ;;  %v323_v52 = vsel %vm318_vm12, %v1677_v59, %v1691_v36 }
 0x10a   :  { %567 = vmatpush.msra.mxu1 %v436_v57  ;;  %587 = vmatpush.msra.mxu2 %v435_v58 }
 0x10b   :  { %551 = vmatpush.msra.mxu0 %v2089_v29 }
 0x10c   :  { %568 = vmatpush.msra.mxu1 %v399_v62  ;;  %588 = vmatpush.msra.mxu2 %v398_v63 }
 0x10d   :  { %v2270_v0 = vpop.permute.xlu0 %1679  ;;  %v2272_v1 = vpop.permute.xlu2 %1704 }
 0x10e   :  { %v2278_v6 = vpop.permute.xlu1 %1654  ;;  %569 = vmatpush.msra.mxu1 %v362_v2  ;;  %589 = vmatpush.msra.mxu2 %v361_v4  ;;  %v1707_v16 = vunpack.i.h.bf16 %v2272_v1  ;;  %v1706_v17 = vunpack.i.l.bf16 %v2272_v1 }
 0x10f   :  { %v1656_v29 = vunpack.i.l.bf16 %v2278_v6 }
 0x110   :  { %570 = vmatpush.msra.mxu1 %v325_v7  ;;  %590 = vmatpush.msra.mxu2 %v324_v10  ;;  %v242_v42 = vsel %vm235_vm14, %v1706_v17, %v1707_v16 }
 0x111   :  { %v434_v11 = vsel %vm429_vm9, %v1637_v51, %v1656_v29 }
 0x112   :  { %571 = vmatpush.msra.mxu1 %v2093_v30  ;;  %591 = vmatpush.msra.mxu2 %v2107_v39  ;;  %v1681_v30 = vunpack.i.l.bf16 %v2270_v0 }
 0x113   :  { %607 = vmatpush.msra.mxu3 %v434_v11 }
 0x114   :  { %v360_v46 = vsel %vm355_vm11, %v1662_v54, %v1681_v30 }
 0x115   :  { %v2291_v12 = vpop.permute.xlu0 %1694  ;;  %v2293_v14 = vpop.permute.xlu2 %1719 }
 0x116   :  { %v1697_v18 = vunpack.i.h.bf16 %v2291_v12  ;;  %v1696_v23 = vunpack.i.l.bf16 %v2291_v12  ;;  %v2300_v25 = vpop.permute.xlu1 %1669  ;;  %v1722_v27 = vunpack.i.h.bf16 %v2293_v14  ;;  %v1721_v31 = vunpack.i.l.bf16 %v2293_v14 }
 0x117   :  { %v1671_v39 = vunpack.i.l.bf16 %v2300_v25 }
 0x118   :  { %v279_v35 = vsel %vm272_vm13, %v1696_v23, %v1697_v18 }
 0x119   :  { %592 = vmatpush.msra.mxu2 %v279_v35  ;;  %v397_v41 = vsel %vm392_vm10, %v1647_v47, %v1671_v39  ;;  %v205_v47 = vsel %vm198_vm15, %v1721_v31, %v1722_v27 }
 0x11a   :  { %608 = vmatpush.msra.mxu3 %v397_v41 }
 0x11b   :  { %593 = vmatpush.msra.mxu2 %v242_v42 }
 0x11c   :  { %609 = vmatpush.msra.mxu3 %v360_v46 }
 0x11d   :  { %v2329_v48 = vpop.permute.xlu0 %1709  ;;  %v2331_v51 = vpop.permute.xlu2 %1734  ;;  %594 = vmatpush.msra.mxu2 %v205_v47  ;;  %v1657_v47 = vunpack.i.h.bf16 %v2278_v6 }
 0x11e   :  { %v1737_v53 = vunpack.i.h.bf16 %v2331_v51  ;;  %v1736_v54 = vunpack.i.l.bf16 %v2331_v51  ;;  %v2340_v56 = vpop.permute.xlu1 %1684  ;;  %610 = vmatpush.msra.mxu3 %v323_v52  ;;  %v1712_v4 = vunpack.i.h.bf16 %v2329_v48  ;;  %v1711_v7 = vunpack.i.l.bf16 %v2329_v48 }
 0x11f   :  { %v1687_v57 = vunpack.i.h.bf16 %v2340_v56  ;;  %v1686_v58 = vunpack.i.l.bf16 %v2340_v56 }
 0x120   :  { %611 = vmatpush.msra.mxu3 %v2111_v40  ;;  %v168_v59 = vsel %vm161_vm0, %v1736_v54, %v1737_v53  ;;  %v207_v52 = vsel %vm198_vm15, %v1712_v4, %v1711_v7 }
 0x121   :  { %v281_v62 = vsel %vm272_vm13, %v1687_v57, %v1686_v58  ;;  %v280_v63 = vsel %vm272_vm13, %v1686_v58, %v1696_v23  ;;  %595 = vmatpush.msra.mxu2 %v168_v59  ;;  %v206_v58 = vsel %vm198_vm15, %v1711_v7, %v1721_v31  ;;  %v1672_v59 = vunpack.i.h.bf16 %v2300_v25 }
 0x122   :  { %552 = vmatpush.msra.mxu0 %v281_v62  ;;  %572 = vmatpush.msra.mxu1 %v280_v63  ;;  %v1682_v31 = vunpack.i.h.bf16 %v2270_v0 }
 0x123   :  { %1589 = vmatmul.msk.f32.vlgmr.msra.gmra.mxu2 %vm536_vm1, %v2352_v61  ;;  %v396_v6 = vsel %vm392_vm10, %v1671_v39, %v1672_v59 }
 0x125   :  { %v2362_v40 = vpop.permute.xlu0 %1724  ;;  %v2368_v10 = vpop.permute.xlu2 %427 }
 0x126   :  { %v2364_v2 = vpop.permute.xlu1 %1699  ;;  %v1727_v35 = vunpack.i.h.bf16 %v2362_v40  ;;  %v1726_v41 = vunpack.i.l.bf16 %v2362_v40 }
 0x127   :  { %v1702_v11 = vunpack.i.h.bf16 %v2364_v2  ;;  %v1701_v23 = vunpack.i.l.bf16 %v2364_v2 }
 0x128   :  { %v169_v63 = vsel %vm161_vm0, %v1726_v41, %v1736_v54  ;;  %v433_v54 = vsel %vm429_vm9, %v1656_v29, %v1657_v47 }
 0x129   :  { %v244_v42 = vsel %vm235_vm14, %v1702_v11, %v1701_v23  ;;  %v243_v46 = vsel %vm235_vm14, %v1701_v23, %v1706_v17  ;;  %v170_v17 = vsel %vm161_vm0, %v1727_v35, %v1726_v41 }
 0x12a   :  { %553 = vmatpush.msra.mxu0 %v244_v42  ;;  %573 = vmatpush.msra.mxu1 %v243_v46 }
 0x12c   :  { %554 = vmatpush.msra.mxu0 %v207_v52  ;;  %574 = vmatpush.msra.mxu1 %v206_v58  ;;  %v1692_v58 = vunpack.i.h.bf16 %v2242_v38 }
 0x12d   :  { %v2388_v62 = vpop.permute.xlu0 %1739 }
 0x12e   :  { %v1742_v23 = vunpack.i.h.bf16 %v2388_v62  ;;  %v1741_v42 = vunpack.i.l.bf16 %v2388_v62  ;;  %v2398_v46 = vpop.permute.xlu1 %1714  ;;  %555 = vmatpush.msra.mxu0 %v170_v17  ;;  %575 = vmatpush.msra.mxu1 %v169_v63  ;;  %v2417_v17 = vpop.permute.xlu2 %390  ;;  %v322_v12 = vsel %vm318_vm12, %v1691_v36, %v1692_v58 }
 0x12f   :  { %v1716_v7 = vunpack.i.l.bf16 %v2398_v46  ;;  %1587 = vmatmul.msk.f32.vlgmr.msra.gmra.mxu0 %vm536_vm1, %v2352_v61  ;;  %1588 = vmatmul.msk.f32.vlgmr.msra.gmra.mxu1 %vm536_vm1, %v2352_v61  ;;  %v1717_v25 = vunpack.i.h.bf16 %v2398_v46 }
 0x130   :  { %627 = vmatpush.msrb.mxu0 %v433_v54  ;;  %v432_v41 = vsel %vm429_vm9, %v1657_v47, %v1741_v42  ;;  %v431_v52 = vsel %vm429_vm9, %v1741_v42, %v1742_v23  ;;  %v359_v47 = vsel %vm355_vm11, %v1681_v30, %v1682_v31  ;;  %v430_v51 = vsel %vm429_vm9, %v1742_v23, %v2368_v10 }
 0x131   :  { %v278_v29 = vsel %vm272_vm13, %v1697_v18, %v1716_v7  ;;  %647 = vmatpush.msrb.mxu1 %v432_v41  ;;  %667 = vmatpush.msrb.mxu2 %v431_v52  ;;  %v277_v36 = vsel %vm272_vm13, %v1716_v7, %v1717_v25 }
 0x132   :  { %628 = vmatpush.msrb.mxu0 %v396_v6  ;;  %612 = vmatpush.msra.mxu3 %v278_v29 }
 0x134   :  { %629 = vmatpush.msrb.mxu0 %v359_v47 }
 0x135   :  { %v1750_v39 = vpop.permute.xlu0 %1749 }
 0x136   :  { %630 = vmatpush.msrb.mxu0 %v322_v12  ;;  %v1752_v18 = vunpack.i.h.bf16 %v1750_v39  ;;  %v1751_v63 = vunpack.i.l.bf16 %v1750_v39  ;;  %v2436_v42 = vpop.permute.xlu1 %1729 }
 0x137   :  { %v1732_v54 = vunpack.i.h.bf16 %v2436_v42  ;;  %v1731_v0 = vunpack.i.l.bf16 %v2436_v42 }
 0x138   :  { %631 = vmatpush.msrb.mxu0 %v2122_v49  ;;  %v395_v30 = vsel %vm392_vm10, %v1672_v59, %v1751_v63  ;;  %v394_v38 = vsel %vm392_vm10, %v1751_v63, %v1752_v18  ;;  %v1765_v59 = vpop.permute.xlu2 %1764  ;;  %v393_v24 = vsel %vm392_vm10, %v1752_v18, %v2417_v17 }
 0x139   :  { %v241_v41 = vsel %vm235_vm14, %v1707_v16, %v1731_v0  ;;  %648 = vmatpush.msrb.mxu1 %v395_v30  ;;  %668 = vmatpush.msrb.mxu2 %v394_v38  ;;  %v240_v49 = vsel %vm235_vm14, %v1731_v0, %v1732_v54  ;;  %v1767_v6 = vunpack.i.h.bf16 %v1765_v59  ;;  %v1766_v29 = vunpack.i.l.bf16 %v1765_v59 }
 0x13a   :  { %632 = vmatpush.msrb.mxu0 %v277_v36  ;;  %613 = vmatpush.msra.mxu3 %v241_v41 }
 0x13b   :  { %v320_v38 = vsel %vm318_vm12, %v1766_v29, %v1767_v6 }
 0x13c   :  { %633 = vmatpush.msrb.mxu0 %v240_v49 }
 0x13d   :  { %v1760_v52 = vpop.permute.xlu0 %1759 }
 0x13e   :  { %v1762_v7 = vunpack.i.h.bf16 %v1760_v52  ;;  %v1761_v47 = vunpack.i.l.bf16 %v1760_v52  ;;  %v2457_v1 = vpop.permute.xlu1 %1744 }
 0x13f   :  { %v1747_v16 = vunpack.i.h.bf16 %v2457_v1  ;;  %v1746_v12 = vunpack.i.l.bf16 %v2457_v1 }
 0x140   :  { %v358_v39 = vsel %vm355_vm11, %v1682_v31, %v1761_v47  ;;  %v357_v63 = vsel %vm355_vm11, %v1761_v47, %v1762_v7  ;;  %v321_v31 = vsel %vm318_vm12, %v1692_v58, %v1766_v29 }
 0x141   :  { %v204_v0 = vsel %vm198_vm15, %v1722_v27, %v1746_v12  ;;  %v203_v30 = vsel %vm198_vm15, %v1746_v12, %v1747_v16  ;;  %649 = vmatpush.msrb.mxu1 %v358_v39  ;;  %669 = vmatpush.msrb.mxu2 %v357_v63 }
 0x142   :  { %614 = vmatpush.msra.mxu3 %v204_v0  ;;  %634 = vmatpush.msrb.mxu0 %v203_v30 }
 0x143   :  { %650 = vmatpush.msrb.mxu1 %v321_v31  ;;  %670 = vmatpush.msrb.mxu2 %v320_v38 }
 0x145   :  { %651 = vmatpush.msrb.mxu1 %v2126_v50  ;;  %671 = vmatpush.msrb.mxu2 %v2164_v8  ;;  %v317_v49 = vpop.permute.xlu0 %316  ;;  %v438_v50 = vsel %vm429_vm9, %v2368_v10, %v1631_v28  ;;  %v269_v8 = vpop.permute.xlu2 %268  ;;  %v401_v28 = vsel %vm392_vm10, %v2417_v17, %v1641_v26 }
 0x146   :  { %v2479_v14 = vpop.permute.xlu1 %1754  ;;  %v319_v13 = vsel %vm318_vm12, %v1767_v6, %v317_v49  ;;  %v327_v26 = vsel %vm318_vm12, %v317_v49, %v1666_v45 }
 0x147   :  { %v1757_v27 = vunpack.i.h.bf16 %v2479_v14  ;;  %v1756_v36 = vunpack.i.l.bf16 %v2479_v14 }
 0x149   :  { %v167_v58 = vsel %vm161_vm0, %v1737_v53, %v1756_v36  ;;  %v166_v41 = vsel %vm161_vm0, %v1756_v36, %v1757_v27 }
 0x14a   :  { %615 = vmatpush.msra.mxu3 %v167_v58  ;;  %635 = vmatpush.msrb.mxu0 %v166_v41 }
 0x14b   :  { %1590 = vmatmul.msk.f32.vlgmr.msra.gmra.mxu3 %vm536_vm1, %v2352_v61  ;;  %1591 = vmatmul.msk.f32.vlgmr.msrb.gmra.mxu0 %vm536_vm1, %v2352_v61 }
 0x14c   :  { %687 = vmatpush.msrb.mxu3 %v430_v51  ;;  %707 = vmatpush.msra.mxu0 %v438_v50 }
 0x14d   :  { %v1775_v23 = vpop.permute.xlu0 %1774  ;;  %v1780_v20 = vpop.permute.xlu2 %1779 }
 0x14e   :  { %688 = vmatpush.msrb.mxu3 %v393_v24  ;;  %708 = vmatpush.msra.mxu0 %v401_v28  ;;  %v354_v53 = vpop.permute.xlu1 %353  ;;  %v1777_v18 = vunpack.i.h.bf16 %v1775_v23  ;;  %v1776_v37 = vunpack.i.l.bf16 %v1775_v23  ;;  %v1782_v45 = vunpack.i.h.bf16 %v1780_v20  ;;  %v1781_v6 = vunpack.i.l.bf16 %v1780_v20 }
 0x14f   :  { %v356_v62 = vsel %vm355_vm11, %v1762_v7, %v354_v53  ;;  %v364_v10 = vsel %vm355_vm11, %v354_v53, %v1651_v33  ;;  %v273_v33 = vsel %vm272_vm13, %v269_v8, %v1687_v57 }
 0x150   :  { %689 = vmatpush.msrb.mxu3 %v356_v62  ;;  %709 = vmatpush.msra.mxu0 %v364_v10  ;;  %v239_v57 = vsel %vm235_vm14, %v1732_v54, %v1776_v37  ;;  %v238_v46 = vsel %vm235_vm14, %v1776_v37, %v1777_v18  ;;  %v201_v29 = vsel %vm198_vm15, %v1781_v6, %v1782_v45 }
 0x152   :  { %690 = vmatpush.msrb.mxu3 %v319_v13  ;;  %710 = vmatpush.msra.mxu0 %v327_v26 }
 0x154   :  { %691 = vmatpush.msrb.mxu3 %v2168_v9  ;;  %711 = vmatpush.msra.mxu0 %v2146_v60 }
 0x155   :  { %v195_v7 = vpop.permute.xlu0 %194  ;;  %v156_v12 = vpop.permute.xlu2 %155 }
 0x156   :  { %v1770_v17 = vpop.permute.xlu1 %1769  ;;  %712 = vmatpush.msra.mxu0 %v273_v33  ;;  %v200_v1 = vsel %vm198_vm15, %v1782_v45, %v195_v7  ;;  %v162_v2 = vsel %vm161_vm0, %v156_v12, %v1727_v35 }
 0x157   :  { %v1772_v59 = vunpack.i.h.bf16 %v1770_v17  ;;  %v1771_v52 = vunpack.i.l.bf16 %v1770_v17 }
 0x159   :  { %v276_v9 = vsel %vm272_vm13, %v1717_v25, %v1771_v52  ;;  %v275_v60 = vsel %vm272_vm13, %v1771_v52, %v1772_v59  ;;  %v274_v56 = vsel %vm272_vm13, %v1772_v59, %v269_v8  ;;  %v202_v25 = vsel %vm198_vm15, %v1747_v16, %v1781_v6 }
 0x15a   :  { %652 = vmatpush.msrb.mxu1 %v276_v9  ;;  %672 = vmatpush.msrb.mxu2 %v275_v60  ;;  %v199_v16 = vsel %vm198_vm15, %v195_v7, %v1712_v4 }
 0x15b   :  { %692 = vmatpush.msrb.mxu3 %v274_v56 }
 0x15c   :  { %653 = vmatpush.msrb.mxu1 %v239_v57  ;;  %673 = vmatpush.msrb.mxu2 %v238_v46 }
 0x15d   :  { %v2583_v35 = vpop.permute.xlu0 %533 }
 0x15e   :  { %v232_v47 = vpop.permute.xlu1 %231  ;;  %654 = vmatpush.msrb.mxu1 %v202_v25  ;;  %674 = vmatpush.msrb.mxu2 %v201_v29 }
 0x15f   :  { %v237_v42 = vsel %vm235_vm14, %v1777_v18, %v232_v47  ;;  %v236_v54 = vsel %vm235_vm14, %v232_v47, %v1702_v11 }
 0x160   :  { %693 = vmatpush.msrb.mxu3 %v237_v42  ;;  %713 = vmatpush.msra.mxu0 %v236_v54 }
 0x162   :  { %694 = vmatpush.msrb.mxu3 %v200_v1  ;;  %714 = vmatpush.msra.mxu0 %v199_v16 }
 0x164   :  { %715 = vmatpush.msra.mxu0 %v162_v2 }
 0x165   :  { %1595 = vmatmul.msk.f32.vlgmr.msra.gmra.mxu0 %vm536_vm1, %v2352_v61 }
 0x166   :  { %v1785_v11 = vpop.permute.xlu1 %1784 }
 0x167   :  { %v1787_v39 = vunpack.i.h.bf16 %v1785_v11  ;;  %v1786_v63 = vunpack.i.l.bf16 %v1785_v11 }
 0x169   :  { %v165_v48 = vsel %vm161_vm0, %v1757_v27, %v1786_v63  ;;  %v164_v4 = vsel %vm161_vm0, %v1786_v63, %v1787_v39  ;;  %v163_v40 = vsel %vm161_vm0, %v1787_v39, %v156_v12 }
 0x16a   :  { %655 = vmatpush.msrb.mxu1 %v165_v48  ;;  %675 = vmatpush.msrb.mxu2 %v164_v4  ;;  %v1354_v48 = vld [vmem:[%s3157_s7] sm:$0xf] }
 0x16b   :  { %695 = vmatpush.msrb.mxu3 %v163_v40  ;;  %1592 = vmatmul.msk.f32.vlgmr.msrb.gmra.mxu1 %vm536_vm1, %v2352_v61 }
 0x16c   :  { %1593 = vmatmul.msk.f32.vlgmr.msrb.gmra.mxu2 %vm536_vm1, %v2352_v61  ;;  %1594 = vmatmul.msk.f32.vlgmr.msrb.gmra.mxu3 %vm536_vm1, %v2352_v61 }
 0x1a6   :  { %v597_v31 = vpop.f32.mrf.mxu2 }
 0x1a7   :  { %v598_v58 = vadd.f32 %v597_v31, %v2583_v35 }
 0x1a9   :  { %v731_v8 = vmul.f32 0.01, %v598_v58  ;;  %vm722_vm4 = vcmp.ge.f32.partialorder %v598_v58, 0.0 }
 0x1ab   :  { %v740_v24 = vsel %vm722_vm4, %v598_v58, %v731_v8 }
 0x1ac   :  { %v557_v0 = vpop.f32.mrf.mxu0  ;;  %v577_v30 = vpop.f32.mrf.mxu1 }
 0x1ad   :  { %v558_v38 = vadd.f32 %v557_v0, %v2583_v35  ;;  %v578_v14 = vadd.f32 %v577_v30, %v2583_v35 }
 0x1af   :  { %vm720_vm2 = vcmp.ge.f32.partialorder %v558_v38, 0.0  ;;  %v729_v27 = vmul.f32 0.01, %v558_v38  ;;  %vm721_vm3 = vcmp.ge.f32.partialorder %v578_v14, 0.0  ;;  %v730_v36 = vmul.f32 0.01, %v578_v14 }
 0x1b1   :  { %v738_v41 = vsel %vm720_vm2, %v558_v38, %v729_v27  ;;  %v739_v49 = vsel %vm721_vm3, %v578_v14, %v730_v36 }
 0x1b2   :  { %v2590_v61 = vmul.f32 %v738_v41, %v114_v21  ;;  %v2594_v50 = vmul.f32 %v739_v49, %v115_v22  ;;  %v2603_v21 = vmul.f32 %v740_v24, %v116_v32 }
 0x1b4   :  { %v1798_v51 = vpack.i.bf16 %v2594_v50, %v2590_v61  ;;  %v1818_v22 = vpack.i.bf16 %v2603_v21, %v2594_v50 }
 0x1b6   :  { %1799 = vrot.lane.b32.xlu1 %v1798_v51, %s2009_s1  ;;  %1794 = vrot.lane.b32.xlu2 %v1798_v51, %s2011_s21 }
 0x1b7   :  { %1789 = vrot.lane.b32.xlu0 %v1798_v51, %s2008_s19 }
 0x1be   :  { %1804 = vrot.lane.b32.xlu1 %v1798_v51, %s2010_s20 }
 0x1bf   :  { %1819 = vrot.lane.b32.xlu0 %v1818_v22, %s2005_s14 }
 0x1c6   :  { %1809 = vrot.lane.b32.xlu1 %v1818_v22, %s2006_s15 }
 0x1c8   :  { %v637_v53 = vpop.f32.mrf.mxu0 }
 0x1c9   :  { %v638_v13 = vadd.f32 %v637_v53, %v2583_v35 }
 0x1cb   :  { %v733_v23 = vmul.f32 0.01, %v638_v13  ;;  %vm724_vm6 = vcmp.ge.f32.partialorder %v638_v13, 0.0 }
 0x1cd   :  { %v742_v33 = vsel %vm724_vm6, %v638_v13, %v733_v23 }
 0x1ce   :  { %v617_v28 = vpop.f32.mrf.mxu3  ;;  %v2623_v17 = vmul.f32 %v742_v33, %v118_v43 }
 0x1cf   :  { %v618_v62 = vadd.f32 %v617_v28, %v2583_v35 }
 0x1d1   :  { %vm723_vm5 = vcmp.ge.f32.partialorder %v618_v62, 0.0  ;;  %v732_v10 = vmul.f32 0.01, %v618_v62 }
 0x1d3   :  { %v741_v26 = vsel %vm723_vm5, %v618_v62, %v732_v10  ;;  %vm1556_vm5 = vcmask 1043456  }
 0x1d4   :  { %v2614_v32 = vmul.f32 %v741_v26, %v117_v34 }
 0x1d6   :  { %v1823_v20 = vpack.i.bf16 %v2614_v32, %v2590_v61  ;;  %v1873_v34 = vpack.i.bf16 %v2623_v17, %v2614_v32 }
 0x1d8   :  { %1824 = vrot.lane.b32.xlu1 %v1823_v20, %s2005_s14  ;;  %1814 = vrot.lane.b32.xlu2 %v1823_v20, %s2006_s15 }
 0x1d9   :  { %1834 = vrot.lane.b32.xlu0 %v1823_v20, %s2004_s3 }
 0x1e0   :  { %1839 = vrot.lane.b32.xlu1 %v1818_v22, %s2007_s16  ;;  %1829 = vrot.lane.b32.xlu2 %v1818_v22, %s2004_s3 }
 0x1e1   :  { %1874 = vrot.lane.b32.xlu0 %v1873_v34, %s2011_s21 }
 0x1e2   :  { %v717_v42 = vpop.f32.mrf.mxu0 }
 0x1e3   :  { %v718_v54 = vadd.f32 %v717_v42, %v2583_v35 }
 0x1e5   :  { %v737_v15 = vmul.f32 0.01, %v718_v54  ;;  %vm728_vm3 = vcmp.ge.f32.partialorder %v718_v54, 0.0 }
 0x1e8   :  { %v657_v18 = vpop.f32.mrf.mxu1  ;;  %1844 = vrot.lane.b32.xlu2 %v1823_v20, %s2007_s16 }
 0x1e9   :  { %v658_v37 = vadd.f32 %v657_v18, %v2583_v35  ;;  %1879 = vrot.lane.b32.xlu0 %v1873_v34, %s2009_s1 }
 0x1eb   :  { %vm725_vm7 = vcmp.ge.f32.partialorder %v658_v37, 0.0  ;;  %v734_v59 = vmul.f32 0.01, %v658_v37 }
 0x1ed   :  { %v743_v43 = vsel %vm725_vm7, %v658_v37, %v734_v59 }
 0x1ee   :  { %v2635_v52 = vmul.f32 %v743_v43, %v119_v44 }
 0x1ef   :  { %v677_v45 = vpop.f32.mrf.mxu2  ;;  %v697_v6 = vpop.f32.mrf.mxu3 }
 0x1f0   :  { %v678_v9 = vadd.f32 %v677_v45, %v2583_v35  ;;  %v698_v60 = vadd.f32 %v697_v6, %v2583_v35  ;;  %v1863_v56 = vpack.i.bf16 %v2635_v52, %v2623_v17 }
 0x1f2   :  { %vm726_vm8 = vcmp.ge.f32.partialorder %v678_v9, 0.0  ;;  %v735_v57 = vmul.f32 0.01, %v678_v9  ;;  %vm727_vm2 = vcmp.ge.f32.partialorder %v698_v60, 0.0  ;;  %v736_v46 = vmul.f32 0.01, %v698_v60  ;;  %1864 = vrot.lane.b32.xlu1 %v1863_v56, %s2007_s16  ;;  %1849 = vrot.lane.b32.xlu2 %v1863_v56, %s2006_s15 }
 0x1f4   :  { %v744_v25 = vsel %vm726_vm8, %v678_v9, %v735_v57  ;;  %v745_v44 = vsel %vm727_vm2, %v698_v60, %v736_v46 }
 0x1f5   :  { %v2645_v29 = vmul.f32 %v744_v25, %v120_v3  ;;  %v2649_v7 = vmul.f32 %v745_v44, %v121_v5  ;;  %v746_v5 = vsel %vm728_vm3, %v718_v54, %v737_v15 }
 0x1f6   :  { %v2666_v12 = vmul.f32 %v2138_v55, %v746_v5 }
 0x1f7   :  { %v1883_v47 = vpack.i.bf16 %v2649_v7, %v2645_v29  ;;  %v1903_v3 = vpack.i.bf16 %v2645_v29, %v2635_v52 }
 0x1f8   :  { %v1918_v1 = vpack.i.bf16 %v2603_v21, %v2666_v12 }
 0x1f9   :  { %1884 = vrot.lane.b32.xlu0 %v1883_v47, %s2006_s15 }
 0x1fa   :  { %1869 = vrot.lane.b32.xlu1 %v1873_v34, %s2008_s19  ;;  %1854 = vrot.lane.b32.xlu2 %v1863_v56, %s2005_s14 }
 0x201   :  { %1889 = vrot.lane.b32.xlu0 %v1883_v47, %s2005_s14 }
 0x202   :  { %1904 = vrot.lane.b32.xlu1 %v1903_v3, %s2008_s19  ;;  %1859 = vrot.lane.b32.xlu2 %v1863_v56, %s2004_s3 }
 0x209   :  { %1899 = vrot.lane.b32.xlu0 %v1883_v47, %s2007_s16 }
 0x20a   :  { %1909 = vrot.lane.b32.xlu1 %v1903_v3, %s2011_s21  ;;  %1894 = vrot.lane.b32.xlu2 %v1883_v47, %s2004_s3 }
 0x210   :  { %v2686_v16 = vpop.permute.xlu2 %1794 }
 0x211   :  { %1919 = vrot.lane.b32.xlu0 %v1918_v1, %s2011_s21  ;;  %v1797_v42 = vunpack.i.h.bf16 %v2686_v16  ;;  %v1796_v54 = vunpack.i.l.bf16 %v2686_v16 }
 0x212   :  { %1914 = vrot.lane.b32.xlu1 %v1918_v1, %s2008_s19  ;;  %1033 = vrot.lane.b32.xlu2 %v2666_v12, %s2006_s15 }
 0x219   :  { %1924 = vrot.lane.b32.xlu0 %v1918_v1, %s2009_s1 }
 0x21a   :  { %1934 = vrot.lane.b32.xlu1 %v1918_v1, %s2010_s20  ;;  %997 = vrot.lane.b32.xlu2 %v2666_v12, %s2005_s14 }
 0x221   :  { %1929 = vrot.lane.b32.xlu0 %v1873_v34, %s2010_s20 }
 0x222   :  { %1939 = vrot.lane.b32.xlu1 %v1903_v3, %s2009_s1  ;;  %961 = vrot.lane.b32.xlu2 %v2666_v12, %s2004_s3 }
 0x228   :  { %v2682_v55 = vpop.permute.xlu1 %1799 }
 0x229   :  { %766 = vrot.lane.b32.xlu0 %v2635_v52, %s2010_s20  ;;  %v2692_v2 = vpop.permute.xlu0 %1789  ;;  %v1802_v15 = vunpack.i.h.bf16 %v2682_v55  ;;  %v1801_v5 = vunpack.i.l.bf16 %v2682_v55 }
 0x22a   :  { %878 = vrot.lane.b32.xlu1 %v2649_v7, %s2008_s19  ;;  %925 = vrot.lane.b32.xlu2 %v2666_v12, %s2007_s16  ;;  %v1792_v9 = vunpack.i.h.bf16 %v2692_v2  ;;  %v1791_v57 = vunpack.i.l.bf16 %v2692_v2 }
 0x230   :  { %v2694_v11 = vpop.permute.xlu1 %1804 }
 0x231   :  { %806 = vrot.lane.b32.xlu0 %v2649_v7, %s2009_s1  ;;  %v1820_v63 = vpop.permute.xlu0 %1819 }
 0x232   :  { %1944 = vrot.lane.b32.xlu1 %v1883_v47, %s2010_s20  ;;  %842 = vrot.lane.b32.xlu2 %v2649_v7, %s2011_s21  ;;  %v2701_v39 = vpop.permute.xlu2 %1814  ;;  %v1822_v4 = vunpack.i.h.bf16 %v1820_v63  ;;  %v1821_v35 = vunpack.i.l.bf16 %v1820_v63  ;;  %v889_v63 = vsel %vm272_vm13, %v1791_v57, %v1792_v9 }
 0x233   :  { %v3162_v0 = vunpack.i.l.bf16 %v2701_v39  ;;  %v1817_v38 = vunpack.i.h.bf16 %v2701_v39 }
 0x234   :  { %v1005_v8 = vsel %vm392_vm10, %v1821_v35, %v1822_v4 }
 0x238   :  { %v1810_v40 = vpop.permute.xlu1 %1809 }
 0x239   :  { %v1812_v30 = vunpack.i.h.bf16 %v1810_v40  ;;  %v1811_v31 = vunpack.i.l.bf16 %v1810_v40  ;;  %1357 = vperm.xlu0 %1627, %v1354_v48   ;;  %v817_v40 = vsel %vm198_vm15, %v1801_v5, %v1802_v15 }
 0x23a   :  { %v1830_v14 = vpop.permute.xlu2 %1829 }
 0x23b   :  { %v1832_v27 = vunpack.i.h.bf16 %v1830_v14  ;;  %v1831_v36 = vunpack.i.l.bf16 %v1830_v14  ;;  %v1042_v58 = vsel %vm429_vm9, %v3162_v0, %v1811_v31  ;;  %v1041_v41 = vsel %vm429_vm9, %v1811_v31, %v1812_v30 }
 0x23c   :  { %1153 = vmatpush.msra.mxu1 %v1042_v58  ;;  %1173 = vmatpush.msra.mxu2 %v1041_v41  ;;  %v1040_v49 = vsel %vm429_vm9, %v1812_v30, %v1817_v38  ;;  %v1597_v58 = vld [vmem:[%s3155_s5 + $0x8] sm:$0xff] }
 0x23d   :  { %1193 = vmatpush.msra.mxu3 %v1040_v49  ;;  %v969_v51 = vsel %vm355_vm11, %v1831_v36, %v1832_v27  ;;  %1140 = vperm.xlu2 %1948, %v1597_v58  }
 0x23e   :  { %1174 = vmatpush.msra.mxu2 %v1005_v8 }
 0x240   :  { %1175 = vmatpush.msra.mxu2 %v969_v51 }
 0x242   :  { %v2720_v24 = vpop.permute.xlu2 %1844 }
 0x243   :  { %v3159_v43 = vunpack.i.l.bf16 %v2720_v24  ;;  %v1847_v60 = vunpack.i.h.bf16 %v2720_v24 }
 0x24a   :  { %v2722_v22 = vpop.permute.xlu1 %1824 }
 0x24b   :  { %v1827_v28 = vunpack.i.h.bf16 %v2722_v22  ;;  %v3161_v53 = vunpack.i.l.bf16 %v2722_v22  ;;  %v2726_v62 = vpop.permute.xlu0 %1834 }
 0x24c   :  { %v1837_v10 = vunpack.i.h.bf16 %v2726_v62  ;;  %v3160_v13 = vunpack.i.l.bf16 %v2726_v62  ;;  %v2730_v26 = vpop.permute.xlu2 %1849 }
 0x24d   :  { %v1851_v23 = vunpack.i.l.bf16 %v2730_v26  ;;  %v1006_v20 = vsel %vm392_vm10, %v3161_v53, %v1821_v35  ;;  %v1004_v33 = vsel %vm392_vm10, %v1822_v4, %v1827_v28  ;;  %v2803_v35 = vld [vmem:[%s3154_s4 + $0x8] sm:$0xff]  ;;  %v1852_v49 = vunpack.i.h.bf16 %v2730_v26 }
 0x24e   :  { %1154 = vmatpush.msra.mxu1 %v1006_v20  ;;  %1194 = vmatpush.msra.mxu3 %v1004_v33  ;;  %v970_v34 = vsel %vm355_vm11, %v3160_v13, %v1831_v36  ;;  %v968_v18 = vsel %vm355_vm11, %v1832_v27, %v1837_v10 }
 0x24f   :  { %v1039_v37 = vsel %vm429_vm9, %v1817_v38, %v1851_v23 }
 0x250   :  { %1155 = vmatpush.msra.mxu1 %v970_v34  ;;  %1195 = vmatpush.msra.mxu3 %v968_v18 }
 0x251   :  { %1213 = vmatpush.msrb.mxu0 %v1039_v37 }
 0x252   :  { %v1840_v59 = vpop.permute.xlu1 %1839 }
 0x253   :  { %v1842_v45 = vunpack.i.h.bf16 %v1840_v59  ;;  %v1841_v6 = vunpack.i.l.bf16 %v1840_v59  ;;  %v2774_v1 = vpop.permute.xlu0 %1874 }
 0x254   :  { %v2752_v56 = vpop.permute.xlu2 %1854 }
 0x255   :  { %v1856_v46 = vunpack.i.l.bf16 %v2752_v56  ;;  %v934_v25 = vsel %vm318_vm12, %v3159_v43, %v1841_v6  ;;  %v933_v44 = vsel %vm318_vm12, %v1841_v6, %v1842_v45  ;;  %v932_v47 = vsel %vm318_vm12, %v1842_v45, %v1847_v60 }
 0x256   :  { %1156 = vmatpush.msra.mxu1 %v934_v25  ;;  %1176 = vmatpush.msra.mxu2 %v933_v44  ;;  %v1857_v20 = vunpack.i.h.bf16 %v2752_v56 }
 0x257   :  { %1196 = vmatpush.msra.mxu3 %v932_v47  ;;  %v1003_v3 = vsel %vm392_vm10, %v1827_v28, %v1856_v46 }
 0x258   :  { %1157 = vmatpush.msra.mxu1 %v2590_v61  ;;  %1177 = vmatpush.msra.mxu2 %v2594_v50  ;;  %v1807_v61 = vunpack.i.h.bf16 %v2694_v11  ;;  %v1806_v50 = vunpack.i.l.bf16 %v2694_v11  ;;  %v1038_v11 = vsel %vm429_vm9, %v1851_v23, %v1852_v49  ;;  %v1002_v26 = vsel %vm392_vm10, %v1856_v46, %v1857_v20 }
 0x259   :  { %1197 = vmatpush.msra.mxu3 %v2603_v21  ;;  %1214 = vmatpush.msrb.mxu0 %v1003_v3  ;;  %v853_v21 = vsel %vm235_vm14, %v1796_v54, %v1797_v42 }
 0x25a   :  { %1178 = vmatpush.msra.mxu2 %v889_v63  ;;  %v781_v30 = vsel %vm161_vm0, %v1806_v50, %v1807_v61 }
 0x25b   :  { %v2817_v38 = vpop.permute.xlu0 %1879 }
 0x25c   :  { %v2791_v48 = vpop.permute.xlu2 %1859  ;;  %1179 = vmatpush.msra.mxu2 %v853_v21 }
 0x25d   :  { %v1861_v4 = vunpack.i.l.bf16 %v2791_v48  ;;  %v1862_v37 = vunpack.i.h.bf16 %v2791_v48 }
 0x25e   :  { %1180 = vmatpush.msra.mxu2 %v817_v40 }
 0x25f   :  { %v967_v31 = vsel %vm355_vm11, %v1837_v10, %v1861_v4  ;;  %v966_v56 = vsel %vm355_vm11, %v1861_v4, %v1862_v37 }
 0x260   :  { %1181 = vmatpush.msra.mxu2 %v781_v30  ;;  %1215 = vmatpush.msrb.mxu0 %v967_v31  ;;  %v3163_v30 = vunpack.i.h.bf16 %v2774_v1 }
 0x261   :  { %1599 = vmatmul.msk.f32.vlgmr.msra.gmra.mxu2 %vm536_vm1, %v2803_v35 }
 0x264   :  { %v2819_v14 = vpop.permute.xlu1 %1864  ;;  %v2842_v10 = vpop.permute.xlu2 %1894 }
 0x265   :  { %v1866_v27 = vunpack.i.l.bf16 %v2819_v14  ;;  %v1896_v33 = vunpack.i.l.bf16 %v2842_v10  ;;  %v1867_v25 = vunpack.i.h.bf16 %v2819_v14 }
 0x267   :  { %v931_v36 = vsel %vm318_vm12, %v1847_v60, %v1866_v27  ;;  %v965_v45 = vsel %vm355_vm11, %v1862_v37, %v1896_v33 }
 0x268   :  { %1216 = vmatpush.msrb.mxu0 %v931_v36 }
 0x26a   :  { %1217 = vmatpush.msrb.mxu0 %v2614_v32 }
 0x26b   :  { %v2830_v41 = vpop.permute.xlu0 %1884 }
 0x26c   :  { %v1886_v8 = vunpack.i.l.bf16 %v2830_v41  ;;  %v2834_v51 = vpop.permute.xlu1 %1869  ;;  %v2864_v6 = vpop.permute.xlu2 %1033 }
 0x26d   :  { %v1872_v21 = vunpack.i.h.bf16 %v2834_v51  ;;  %v1871_v58 = vunpack.i.l.bf16 %v2834_v51  ;;  %v3165_v51 = vunpack.i.h.bf16 %v2774_v1 }
 0x26e   :  { %v1037_v28 = vsel %vm429_vm9, %v1852_v49, %v1886_v8  ;;  %v1882_v49 = vunpack.i.h.bf16 %v2817_v38 }
 0x26f   :  { %1253 = vmatpush.msrb.mxu2 %v1037_v28 }
 0x273   :  { %v2844_v32 = vpop.permute.xlu0 %1889 }
 0x274   :  { %v1891_v34 = vunpack.i.l.bf16 %v2844_v32  ;;  %v2849_v18 = vpop.permute.xlu1 %1904  ;;  %v2892_v28 = vpop.permute.xlu2 %997 }
 0x275   :  { %v1906_v3 = vunpack.i.l.bf16 %v2849_v18 }
 0x276   :  { %v1001_v59 = vsel %vm392_vm10, %v1857_v20, %v1891_v34  ;;  %v1907_v20 = vunpack.i.h.bf16 %v2849_v18 }
 0x277   :  { %1254 = vmatpush.msrb.mxu2 %v1001_v59  ;;  %v885_v31 = vsel %vm272_vm13, %v1872_v21, %v1906_v3 }
 0x279   :  { %1255 = vmatpush.msrb.mxu2 %v965_v45 }
 0x27b   :  { %v2866_v60 = vpop.permute.xlu0 %1899 }
 0x27c   :  { %v1901_v44 = vunpack.i.l.bf16 %v2866_v60  ;;  %v2870_v47 = vpop.permute.xlu1 %1909 }
 0x27d   :  { %v1911_v40 = vunpack.i.l.bf16 %v2870_v47  ;;  %v1912_v37 = vunpack.i.h.bf16 %v2870_v47 }
 0x27e   :  { %v929_v63 = vsel %vm318_vm12, %v1867_v25, %v1901_v44 }
 0x27f   :  { %1256 = vmatpush.msrb.mxu2 %v929_v63  ;;  %v848_v18 = vsel %vm235_vm14, %v1911_v40, %v1912_v37 }
 0x281   :  { %1257 = vmatpush.msrb.mxu2 %v2635_v52  ;;  %v849_v52 = vsel %vm235_vm14, %v3163_v30, %v1911_v40  ;;  %v1876_v30 = vunpack.i.l.bf16 %v2774_v1 }
 0x283   :  { %v2889_v36 = vpop.permute.xlu0 %1919  ;;  %1258 = vmatpush.msrb.mxu2 %v885_v31 }
 0x284   :  { %v2894_v59 = vpop.permute.xlu1 %1914  ;;  %v1922_v45 = vunpack.i.h.bf16 %v2889_v36  ;;  %v3164_v63 = vunpack.i.l.bf16 %v2889_v36 }
 0x285   :  { %v1917_v43 = vunpack.i.h.bf16 %v2894_v59  ;;  %v1916_v31 = vunpack.i.l.bf16 %v2894_v59  ;;  %1259 = vmatpush.msrb.mxu2 %v849_v52 }
 0x286   :  { %v854_v2 = vsel %vm235_vm14, %v3164_v63, %v1796_v54  ;;  %v1892_v63 = vunpack.i.h.bf16 %v2844_v32 }
 0x287   :  { %v890_v13 = vsel %vm272_vm13, %v1916_v31, %v1791_v57  ;;  %v888_v53 = vsel %vm272_vm13, %v1792_v9, %v1917_v43  ;;  %v887_v0 = vsel %vm272_vm13, %v1917_v43, %v1871_v58  ;;  %v852_v9 = vsel %vm235_vm14, %v1797_v42, %v1922_v45 }
 0x288   :  { %1158 = vmatpush.msra.mxu1 %v890_v13  ;;  %1198 = vmatpush.msra.mxu3 %v888_v53  ;;  %v851_v53 = vsel %vm235_vm14, %v1922_v45, %v1876_v30  ;;  %v1881_v13 = vunpack.i.l.bf16 %v2817_v38  ;;  %v1887_v42 = vunpack.i.h.bf16 %v2830_v41  ;;  %v1000_v41 = vsel %vm392_vm10, %v1891_v34, %v1892_v63 }
 0x289   :  { %1218 = vmatpush.msrb.mxu0 %v887_v0  ;;  %v930_v34 = vsel %vm318_vm12, %v1866_v27, %v1867_v25  ;;  %v884_v27 = vsel %vm272_vm13, %v1906_v3, %v1907_v20  ;;  %v850_v3 = vsel %vm235_vm14, %v1876_v30, %v3165_v51 }
 0x28a   :  { %1159 = vmatpush.msra.mxu1 %v854_v2  ;;  %1199 = vmatpush.msra.mxu3 %v852_v9  ;;  %v2945_v2 = vpop.permute.xlu2 %961  ;;  %v1035_v48 = vsel %vm429_vm9, %v1887_v42, %v2864_v6  ;;  %v814_v1 = vsel %vm198_vm15, %v1881_v13, %v1882_v49 }
 0x28b   :  { %v2935_v0 = vpop.permute.xlu0 %1924  ;;  %1219 = vmatpush.msrb.mxu0 %v851_v53 }
 0x28c   :  { %v1927_v43 = vunpack.i.h.bf16 %v2935_v0  ;;  %v1926_v57 = vunpack.i.l.bf16 %v2935_v0  ;;  %v2940_v16 = vpop.permute.xlu1 %1934  ;;  %v1353_v0 = vld [vmem:[%s3156_s6] sm:$0xf]  ;;  %s2012_s6 = smov [#allocation6]  }
 0x28d   :  { %v1937_v54 = vunpack.i.h.bf16 %v2940_v16  ;;  %v1936_v52 = vunpack.i.l.bf16 %v2940_v16  ;;  %s1575_s9 = sshll.u32 %s2012_s6, 4  ;;  %s1576_s9 = int_to_ptr.vmem [resolvable:$true] %s1575_s9 }
 0x28e   :  { %v818_v45 = vsel %vm198_vm15, %v1926_v57, %v1801_v5  ;;  %v816_v9 = vsel %vm198_vm15, %v1802_v15, %v1927_v43  ;;  %v815_v53 = vsel %vm198_vm15, %v1927_v43, %v1881_v13  ;;  %v1897_v15 = vunpack.i.h.bf16 %v2842_v10 }
 0x28f   :  { %1160 = vmatpush.msra.mxu1 %v818_v45  ;;  %1200 = vmatpush.msra.mxu3 %v816_v9  ;;  %v782_v5 = vsel %vm161_vm0, %v1936_v52, %v1806_v50  ;;  %v780_v55 = vsel %vm161_vm0, %v1807_v61, %v1937_v54  ;;  %v1036_v43 = vsel %vm429_vm9, %v1886_v8, %v1887_v42  ;;  %v1902_v61 = vunpack.i.h.bf16 %v2866_v60 }
 0x290   :  { %1220 = vmatpush.msrb.mxu0 %v815_v53  ;;  %v964_v32 = vsel %vm355_vm11, %v1896_v33, %v1897_v15  ;;  %v963_v25 = vsel %vm355_vm11, %v1897_v15, %v2945_v2  ;;  %v3166_v9 = vunpack.i.l.bf16 %v2701_v39  ;;  %v3167_v39 = vunpack.i.l.bf16 %v2722_v22 }
 0x291   :  { %1161 = vmatpush.msra.mxu1 %v782_v5  ;;  %1201 = vmatpush.msra.mxu3 %v780_v55  ;;  %v928_v10 = vsel %vm318_vm12, %v1901_v44, %v1902_v61  ;;  %v999_v44 = vsel %vm392_vm10, %v1892_v63, %v2892_v28  ;;  %v3169_v22 = vunpack.i.l.bf16 %v2720_v24 }
 0x292   :  { %1598 = vmatmul.msk.f32.vlgmr.msra.gmra.mxu1 %vm536_vm1, %v2803_v35  ;;  %1600 = vmatmul.msk.f32.vlgmr.msra.gmra.mxu3 %vm536_vm1, %v2803_v35  ;;  %v926_v4 = vpop.permute.xlu2 %925  ;;  %v1043_v38 = vsel %vm429_vm9, %v2864_v6, %v3166_v9  ;;  %v1007_v6 = vsel %vm392_vm10, %v2892_v28, %v3167_v39  ;;  %vm1360_vm10 = vcmask 64512  }
 0x293   :  { %1273 = vmatpush.msrb.mxu3 %v1036_v43  ;;  %1233 = vmatpush.msrb.mxu1 %v1038_v11  ;;  %v1930_v50 = vpop.permute.xlu0 %1929  ;;  %v3168_v11 = vunpack.i.l.bf16 %v2726_v62  ;;  %v935_v28 = vsel %vm318_vm12, %v926_v4, %v3169_v22 }
 0x294   :  { %v1931_v8 = vunpack.i.l.bf16 %v1930_v50  ;;  %v2998_v23 = vpop.permute.xlu1 %1939  ;;  %v1932_v60 = vunpack.i.h.bf16 %v1930_v50 }
 0x295   :  { %1274 = vmatpush.msrb.mxu3 %v1000_v41  ;;  %1234 = vmatpush.msrb.mxu1 %v1002_v26  ;;  %v1941_v45 = vunpack.i.l.bf16 %v2998_v23  ;;  %v1942_v42 = vunpack.i.h.bf16 %v2998_v23 }
 0x296   :  { %v779_v46 = vsel %vm161_vm0, %v1937_v54, %v1931_v8  ;;  %v778_v30 = vsel %vm161_vm0, %v1931_v8, %v1932_v60 }
 0x297   :  { %1275 = vmatpush.msrb.mxu3 %v964_v32  ;;  %1235 = vmatpush.msrb.mxu1 %v966_v56  ;;  %v813_v33 = vsel %vm198_vm15, %v1882_v49, %v1941_v45  ;;  %v812_v47 = vsel %vm198_vm15, %v1941_v45, %v1942_v42 }
 0x298   :  { %1221 = vmatpush.msrb.mxu0 %v779_v46  ;;  %1260 = vmatpush.msrb.mxu2 %v813_v33 }
 0x299   :  { %1601 = vmatmul.msk.f32.vlgmr.msrb.gmra.mxu0 %vm536_vm1, %v2803_v35  ;;  %1276 = vmatpush.msrb.mxu3 %v928_v10 }
 0x29a   :  { %1236 = vmatpush.msrb.mxu1 %v930_v34  ;;  %1293 = vmatpush.msra.mxu0 %v1035_v48  ;;  %v843_v40 = vpop.permute.xlu2 %842 }
 0x29b   :  { %1277 = vmatpush.msrb.mxu3 %v2645_v29  ;;  %v767_v14 = vpop.permute.xlu0 %766  ;;  %v886_v29 = vsel %vm272_vm13, %v1871_v58, %v1872_v21  ;;  %v927_v21 = vsel %vm318_vm12, %v1902_v61, %v926_v4  ;;  %v971_v61 = vsel %vm355_vm11, %v2945_v2, %v3168_v11  ;;  %v3170_v2 = vunpack.i.l.bf16 %v2889_v36 }
 0x29c   :  { %1237 = vmatpush.msrb.mxu1 %v2623_v17  ;;  %1294 = vmatpush.msra.mxu0 %v999_v44  ;;  %v879_v17 = vpop.permute.xlu1 %878  ;;  %v777_v63 = vsel %vm161_vm0, %v1932_v60, %v767_v14 }
 0x29d   :  { %1278 = vmatpush.msrb.mxu3 %v884_v27  ;;  %1261 = vmatpush.msrb.mxu2 %v777_v63  ;;  %v883_v58 = vsel %vm272_vm13, %v1907_v20, %v879_v17  ;;  %v882_v62 = vsel %vm272_vm13, %v879_v17, %v1916_v31  ;;  %v846_v24 = vsel %vm235_vm14, %v843_v40, %v3170_v2 }
 0x29e   :  { %1238 = vmatpush.msrb.mxu1 %v886_v29  ;;  %1295 = vmatpush.msra.mxu0 %v963_v25 }
 0x29f   :  { %1279 = vmatpush.msrb.mxu3 %v848_v18  ;;  %1603 = vmatmul.msk.f32.vlgmr.msrb.gmra.mxu2 %vm536_vm1, %v2803_v35 }
 0x2a0   :  { %1239 = vmatpush.msrb.mxu1 %v850_v3  ;;  %1296 = vmatpush.msra.mxu0 %v927_v21 }
 0x2a1   :  { %1280 = vmatpush.msrb.mxu3 %v812_v47 }
 0x2a2   :  { %1240 = vmatpush.msrb.mxu1 %v814_v1  ;;  %1297 = vmatpush.msra.mxu0 %v2649_v7  ;;  %v847_v7 = vsel %vm235_vm14, %v1912_v37, %v843_v40  ;;  %v1141_v36 = vpop.permute.xlu2 %1140 }
 0x2a3   :  { %v807_v54 = vpop.permute.xlu0 %806 }
 0x2a4   :  { %1241 = vmatpush.msrb.mxu1 %v778_v30  ;;  %1298 = vmatpush.msra.mxu0 %v883_v58  ;;  %v1945_v13 = vpop.permute.xlu1 %1944  ;;  %v811_v55 = vsel %vm198_vm15, %v1942_v42, %v807_v54  ;;  %v810_v50 = vsel %vm198_vm15, %v807_v54, %v1926_v57 }
 0x2a5   :  { %1602 = vmatmul.msk.f32.vlgmr.msrb.gmra.mxu1 %vm536_vm1, %v2803_v35  ;;  %v1947_v53 = vunpack.i.h.bf16 %v1945_v13  ;;  %v1946_v5 = vunpack.i.l.bf16 %v1945_v13 }
 0x2a6   :  { %1313 = vmatpush.msra.mxu1 %v1043_v38  ;;  %1299 = vmatpush.msra.mxu0 %v847_v7 }
 0x2a7   :  { %v776_v15 = vsel %vm161_vm0, %v767_v14, %v1946_v5  ;;  %v775_v43 = vsel %vm161_vm0, %v1946_v5, %v1947_v53 }
 0x2a8   :  { %1314 = vmatpush.msra.mxu1 %v1007_v6  ;;  %1300 = vmatpush.msra.mxu0 %v811_v55 }
 0x2a9   :  { %1281 = vmatpush.msrb.mxu3 %v776_v15 }
 0x2aa   :  { %1315 = vmatpush.msra.mxu1 %v971_v61  ;;  %1604 = vmatmul.msk.f32.vlgmr.msrb.gmra.mxu3 %vm536_vm1, %v2803_v35 }
 0x2ab   :  { %1301 = vmatpush.msra.mxu0 %v775_v43  ;;  %v1358_v1 = vpop.permute.xlu0 %1357 }
 0x2ac   :  { %1316 = vmatpush.msra.mxu1 %v935_v28  ;;  %1605 = vmatmul.msk.f32.vlgmr.msra.gmra.mxu0 %vm536_vm1, %v2803_v35 }
 0x2ae   :  { %1317 = vmatpush.msra.mxu1 %v2666_v12  ;;  %v774_v12 = vsel %vm161_vm0, %v1947_v53, %v1936_v52 }
 0x2b0   :  { %1318 = vmatpush.msra.mxu1 %v882_v62 }
 0x2b2   :  { %1319 = vmatpush.msra.mxu1 %v846_v24 }
 0x2b4   :  { %1320 = vmatpush.msra.mxu1 %v810_v50 }
 0x2b6   :  { %1321 = vmatpush.msra.mxu1 %v774_v12 }
 0x2b7   :  { %1606 = vmatmul.msk.f32.vlgmr.msra.gmra.mxu1 %vm536_vm1, %v2803_v35 }
 0x2e4   :  { %v1183_v59 = vpop.f32.mrf.mxu2 }
 0x2e5   :  { %v1184_v31 = vadd.f32 %v1183_v59, %v1141_v36 }
 0x2e7   :  { %vm1327_vm9 = vcmp.ge.f32.partialorder %v1184_v31, 0.0  ;;  %v1336_v41 = vmul.f32 0.01, %v1184_v31 }
 0x2e9   :  { %v1345_v57 = vsel %vm1327_vm9, %v1184_v31, %v1336_v41 }
 0x2ea   :  { %1399 = vmatpush.msra.mxu3 %v1345_v57 }
 0x2eb   :  { %1608 = vmatmul.msk.f32.vlgmr.msra.gmra.mxu3 %vm1360_vm10, %v1353_v0 }
 0x30f   :  { %v1163_v19 = vpop.f32.mrf.mxu1 }
 0x310   :  { %v1164_v16 = vadd.f32 %v1163_v19, %v1141_v36 }
 0x312   :  { %vm1326_vm11 = vcmp.ge.f32.partialorder %v1164_v16, 0.0  ;;  %v1335_v52 = vmul.f32 0.01, %v1164_v16 }
 0x314   :  { %v1344_v8 = vsel %vm1326_vm11, %v1164_v16, %v1335_v52 }
 0x315   :  { %1379 = vmatpush.msra.mxu2 %v1344_v8  ;;  %v1203_v23 = vpop.f32.mrf.mxu3 }
 0x316   :  { %v1223_v35 = vpop.f32.mrf.mxu0  ;;  %1607 = vmatmul.msk.f32.vlgmr.msra.gmra.mxu2 %vm1360_vm10, %v1353_v0  ;;  %v1204_v49 = vadd.f32 %v1203_v23, %v1141_v36 }
 0x317   :  { %v1224_v26 = vadd.f32 %v1223_v35, %v1141_v36 }
 0x318   :  { %vm1328_vm13 = vcmp.ge.f32.partialorder %v1204_v49, 0.0  ;;  %v1337_v32 = vmul.f32 0.01, %v1204_v49 }
 0x319   :  { %vm1329_vm12 = vcmp.ge.f32.partialorder %v1224_v26, 0.0  ;;  %v1338_v45 = vmul.f32 0.01, %v1224_v26 }
 0x31a   :  { %v1346_v46 = vsel %vm1328_vm13, %v1204_v49, %v1337_v32 }
 0x31b   :  { %v1347_v56 = vsel %vm1329_vm12, %v1224_v26, %v1338_v45  ;;  %1419 = vmatpush.msrb.mxu2 %v1346_v46 }
 0x31c   :  { %1439 = vmatpush.msrb.mxu3 %v1347_v56 }
 0x31d   :  { %1610 = vmatmul.msk.f32.vlgmr.msrb.gmra.mxu3 %vm1360_vm10, %v1353_v0 }
 0x31e   :  { %1609 = vmatmul.msk.f32.vlgmr.msrb.gmra.mxu2 %vm1360_vm10, %v1353_v0 }
 0x322   :  { %v1243_v20 = vpop.f32.mrf.mxu1  ;;  %v1263_v33 = vpop.f32.mrf.mxu2 }
 0x323   :  { %v1244_v10 = vadd.f32 %v1243_v20, %v1141_v36  ;;  %v1264_v48 = vadd.f32 %v1263_v33, %v1141_v36 }
 0x325   :  { %vm1330_vm14 = vcmp.ge.f32.partialorder %v1244_v10, 0.0  ;;  %v1339_v4 = vmul.f32 0.01, %v1244_v10  ;;  %vm1331_vm15 = vcmp.ge.f32.partialorder %v1264_v48, 0.0  ;;  %v1340_v34 = vmul.f32 0.01, %v1264_v48 }
 0x327   :  { %v1348_v37 = vsel %vm1330_vm14, %v1244_v10, %v1339_v4  ;;  %v1349_v60 = vsel %vm1331_vm15, %v1264_v48, %v1340_v34 }
 0x328   :  { %1459 = vmatpush.msra.mxu2 %v1348_v37  ;;  %1479 = vmatpush.msra.mxu3 %v1349_v60 }
 0x329   :  { %v1303_v44 = vpop.f32.mrf.mxu0  ;;  %1611 = vmatmul.msk.f32.vlgmr.msra.gmra.mxu2 %vm1360_vm10, %v1353_v0  ;;  %1612 = vmatmul.msk.f32.vlgmr.msra.gmra.mxu3 %vm1360_vm10, %v1353_v0 }
 0x32a   :  { %v1304_v42 = vadd.f32 %v1303_v44, %v1141_v36 }
 0x32c   :  { %vm1333_vm0 = vcmp.ge.f32.partialorder %v1304_v42, 0.0  ;;  %v1342_v14 = vmul.f32 0.01, %v1304_v42 }
 0x32d   :  { %v1283_v27 = vpop.f32.mrf.mxu3 }
 0x32e   :  { %v1284_v29 = vadd.f32 %v1283_v27, %v1141_v36  ;;  %v1351_v25 = vsel %vm1333_vm0, %v1304_v42, %v1342_v14 }
 0x32f   :  { %1519 = vmatpush.msrb.mxu1 %v1351_v25 }
 0x330   :  { %vm1332_vm1 = vcmp.ge.f32.partialorder %v1284_v29, 0.0  ;;  %v1341_v17 = vmul.f32 0.01, %v1284_v29  ;;  %1614 = vmatmul.msk.f32.vlgmr.msrb.gmra.mxu1 %vm1360_vm10, %v1353_v0 }
 0x332   :  { %v1350_v63 = vsel %vm1332_vm1, %v1284_v29, %v1341_v17 }
 0x333   :  { %1499 = vmatpush.msrb.mxu0 %v1350_v63 }
 0x334   :  { %v1323_v18 = vpop.f32.mrf.mxu1  ;;  %1613 = vmatmul.msk.f32.vlgmr.msrb.gmra.mxu0 %vm1360_vm10, %v1353_v0 }
 0x335   :  { %v1324_v51 = vadd.f32 %v1323_v18, %v1141_v36 }
 0x337   :  { %vm1334_vm4 = vcmp.ge.f32.partialorder %v1324_v51, 0.0  ;;  %v1343_v3 = vmul.f32 0.01, %v1324_v51 }
 0x339   :  { %v1352_v21 = vsel %vm1334_vm4, %v1324_v51, %v1343_v3 }
 0x33a   :  { %1539 = vmatpush.msrb.mxu2 %v1352_v21 }
 0x33b   :  { %1615 = vmatmul.msk.f32.vlgmr.msrb.gmra.mxu2 %vm1360_vm10, %v1353_v0 }
 0x36e   :  { %v1401_v47 = vpop.f32.mrf.mxu3 }
 0x36f   :  { %v1402_v40 = vadd.f32 %v1401_v47, %v1358_v1 }
 0x371   :  { %v1552_v58 = vrot.slane %v1402_v40, 4 }
 0x399   :  { %v1381_v30 = vpop.f32.mrf.mxu2 }
 0x39a   :  { %v1382_v54 = vadd.f32 %v1381_v30, %v1358_v1 }
 0x39c   :  { %v1557_v9 = vsel %vm1556_vm5, %v1382_v54, %v1552_v58 }
 0x39d   :  { %1565 = vst [vmem:[#allocation6] sm:$0xff] %v1557_v9 }
 0x3a0   :  { %v1441_v38 = vpop.f32.mrf.mxu3 }
 0x3a1   :  { %v1442_v13 = vadd.f32 %v1441_v38, %v1358_v1  ;;  %v1421_v7 = vpop.f32.mrf.mxu2 }
 0x3a2   :  { %v1422_v5 = vadd.f32 %v1421_v7, %v1358_v1 }
 0x3a3   :  { %v1553_v53 = vrot.slane %v1442_v13, 4 }
 0x3a5   :  { %v1558_v55 = vsel %vm1556_vm5, %v1422_v5, %v1553_v53 }
 0x3a6   :  { %1566 = vst [vmem:[#allocation6 + $0x8] sm:$0xff] %v1558_v55 }
 0x3ac   :  { %v1461_v39 = vpop.f32.mrf.mxu2  ;;  %v1481_v6 = vpop.f32.mrf.mxu3 }
 0x3ad   :  { %v1521_v15 = vpop.f32.mrf.mxu1  ;;  %v1482_v43 = vadd.f32 %v1481_v6, %v1358_v1  ;;  %v1462_v61 = vadd.f32 %v1461_v39, %v1358_v1 }
 0x3ae   :  { %v1522_v11 = vadd.f32 %v1521_v15, %v1358_v1 }
 0x3af   :  { %v1554_v22 = vrot.slane %v1482_v43, 4 }
 0x3b0   :  { %v1555_v2 = vrot.slane %v1522_v11, 4 }
 0x3b1   :  { %v1501_v28 = vpop.f32.mrf.mxu0  ;;  %v1559_v62 = vsel %vm1556_vm5, %v1462_v61, %v1554_v22 }
 0x3b2   :  { %v1502_v24 = vadd.f32 %v1501_v28, %v1358_v1  ;;  %1567 = vst [vmem:[#allocation6 + $0x10] sm:$0xff] %v1559_v62 }
 0x3b4   :  { %v1560_v50 = vsel %vm1556_vm5, %v1502_v24, %v1555_v2 }
 0x3b5   :  { %1568 = vst [vmem:[#allocation6 + $0x18] sm:$0xff] %v1560_v50 }
 0x3be   :  { %v1541_v12 = vpop.f32.mrf.mxu2 }
 0x3bf   :  { %v1542_v36 = vadd.f32 %v1541_v12, %v1358_v1 }
 0x3c1   :  { %1569 = vst [vmem:[#allocation6 + $0x20] sm:$0xf] %v1542_v36 }
 0x3c2   :  { %1580 = dma.vmem_to_hbm [thread:$0]  %s1576_s9, 576, %s1578_s12, [#allocation5]  }
 0x3c3   :  { %2000 = dma.done.wait [#allocation5], 576  }
 0x3c4   :  { %2001 = vsyncadd [#allocation5], 4294966720 }
 0x3c5   :  { %1585 = vsyncpa [#allocation4], 1 }
 0x3c6   :  { %1586 = vsyncpa [#allocation5], 1 }

</bundles_post_ra>
